<compile_context>
chip_gen: v7x
topology: tpu7x:2x2x1
jax: 0.10.0
libtpu: 0.0.40
codegen_flags: <defaults>
</compile_context>

<pallas_src>
import jax
import jax.numpy as jnp
from jax.experimental import pallas as pl
from jax.experimental.pallas import tpu as pltpu

INPUT_DIM = 15
HIDDEN1 = 32          # lstm1 hidden size
HIDDEN2 = 12          # lstm2 hidden size
OUTPUT_DIM = 6
NUM_TIMESTEPS = 3     # decoder length (self.num_timesteps)


def _sigmoid(x):
    # One EUP push (tanh) instead of exp + reciprocal.
    return 0.5 * jnp.tanh(0.5 * x) + 0.5


def _lstm_cell(xt, h, c, w_packed, b, H):
    """One PyTorch-semantics LSTM cell step with fused [x, h] matmul.

    xt, h, c are f32; w_packed is bf16 (D+H, 4H); gate order i, f, g, o.
    """
    zh = jnp.concatenate([xt, h], axis=1).astype(jnp.bfloat16)
    gates = jnp.dot(zh, w_packed, preferred_element_type=jnp.float32) + b
    i = _sigmoid(gates[:, 0 * H:1 * H])
    f = _sigmoid(gates[:, 1 * H:2 * H])
    g = jnp.tanh(gates[:, 2 * H:3 * H])
    o = _sigmoid(gates[:, 3 * H:4 * H])
    c_new = f * c + i * g
    h_new = o * jnp.tanh(c_new)
    return h_new, c_new


def seq2seq_kernel(x_ref,
                   w1_ref, b1_ref,
                   w2_ref, b2_ref,
                   wfc_ref, bfc_ref,
                   out_ref):
    TB = x_ref.shape[0]
    T = x_ref.shape[1]

    w1 = w1_ref[...]       # (D_in+H1, 4*H1)  bf16
    b1 = b1_ref[...]       # (1, 4*H1)        f32  (b_ih + b_hh)
    w2 = w2_ref[...]       # (H1+H2, 4*H2)    bf16
    b2 = b2_ref[...]       # (1, 4*H2)        f32
    wfc = wfc_ref[...]     # (H2, O)          bf16
    bfc = bfc_ref[...]     # (1, O)           f32

    H1 = HIDDEN1
    H2 = HIDDEN2

    # ---- encoder LSTM (lstm1), zero initial state ----
    h1 = jnp.zeros((TB, H1), jnp.float32)
    c1 = jnp.zeros((TB, H1), jnp.float32)
    for t in range(T):                      # T small & static -> unrolled
        xt = x_ref[:, t, :].astype(jnp.float32)   # one timestep at a time
        h1, c1 = _lstm_cell(xt, h1, c1, w1, b1, H1)

    # x[:, -1:, :].expand(-1, num_timesteps, -1): last-step output == final h1,
    # fed identically at every decoder step.
    last = h1                               # (TB, H1)

    # ---- decoder LSTM (lstm2) + fc, fused; single lane-dense store ----
    h2 = jnp.zeros((TB, H2), jnp.float32)
    c2 = jnp.zeros((TB, H2), jnp.float32)
    nt = out_ref.shape[1] // OUTPUT_DIM
    ys = []
    for _ in range(nt):
        h2, c2 = _lstm_cell(last, h2, c2, w2, b2, H2)
        y = jnp.dot(h2.astype(jnp.bfloat16), wfc,
                    preferred_element_type=jnp.float32) + bfc
        ys.append(y)
    out_ref[...] = jnp.concatenate(ys, axis=1).astype(out_ref.dtype)


def _round_up(n, m):
    return ((n + m - 1) // m) * m


def seq2seq_forward(x, params, *, batch_tile=256):
    B, T, D = x.shape
    assert D == INPUT_DIM

    # Batch tile: large when B is large, rounded to a sublane multiple (8).
    TB = min(batch_tile, _round_up(B, 8))
    B_pad = _round_up(B, TB)
    if B_pad != B:
        x = jnp.pad(x, ((0, B_pad - B), (0, 0), (0, 0)))

    NTO = NUM_TIMESTEPS * OUTPUT_DIM
    grid = (B_pad // TB,)

    in_specs = [
        pl.BlockSpec((TB, T, INPUT_DIM), lambda b: (b, 0, 0)),
        # weights/biases: full shape, constant index_map -> resident in VMEM
        pl.BlockSpec(params["w1"].shape, lambda b: (0, 0)),
        pl.BlockSpec(params["b1"].shape, lambda b: (0, 0)),
        pl.BlockSpec(params["w2"].shape, lambda b: (0, 0)),
        pl.BlockSpec(params["b2"].shape, lambda b: (0, 0)),
        pl.BlockSpec(params["w_fc"].shape, lambda b: (0, 0)),
        pl.BlockSpec(params["b_fc"].shape, lambda b: (0, 0)),
    ]
    out_specs = pl.BlockSpec((TB, NTO), lambda b: (b, 0))

    out = pl.pallas_call(
        seq2seq_kernel,
        out_shape=jax.ShapeDtypeStruct((B_pad, NTO), jnp.float32),
        grid=grid,
        in_specs=in_specs,
        out_specs=out_specs,
        compiler_params=pltpu.CompilerParams(
            dimension_semantics=("parallel",)),
    )(x, params["w1"], params["b1"], params["w2"], params["b2"],
      params["w_fc"], params["b_fc"])

    return out[:B].reshape(B, NUM_TIMESTEPS, OUTPUT_DIM)


def init_params(key):
    """Deterministic init mimicking PyTorch's U(-1/sqrt(H), 1/sqrt(H)).

    Weights are pre-transposed and the ih/hh pair of each LSTM is stacked into
    a single (D+H, 4H) operand so the kernel does one matmul per cell step.
    MXU operands are stored in bf16; biases stay f32.
    """
    ks = jax.random.split(key, 12)

    def unif(k, shape, bound):
        return jax.random.uniform(k, shape, jnp.float32, -bound, bound)

    k1 = 1.0 / (HIDDEN1 ** 0.5)
    k2 = 1.0 / (HIDDEN2 ** 0.5)

    # lstm1: weight_ih (4H1, D_in), weight_hh (4H1, H1), biases (4H1,)
    w_ih1 = unif(ks[0], (4 * HIDDEN1, INPUT_DIM), k1)
    w_hh1 = unif(ks[1], (4 * HIDDEN1, HIDDEN1), k1)
    b_ih1 = unif(ks[2], (4 * HIDDEN1,), k1)
    b_hh1 = unif(ks[3], (4 * HIDDEN1,), k1)

    # lstm2: weight_ih (4H2, H1), weight_hh (4H2, H2), biases (4H2,)
    w_ih2 = unif(ks[4], (4 * HIDDEN2, HIDDEN1), k2)
    w_hh2 = unif(ks[5], (4 * HIDDEN2, HIDDEN2), k2)
    b_ih2 = unif(ks[6], (4 * HIDDEN2,), k2)
    b_hh2 = unif(ks[7], (4 * HIDDEN2,), k2)

    # fc: weight (O, H2), bias (O,)
    kf = 1.0 / (HIDDEN2 ** 0.5)
    w_fc = unif(ks[8], (OUTPUT_DIM, HIDDEN2), kf)
    b_fc = unif(ks[9], (OUTPUT_DIM,), kf)

    w1 = jnp.concatenate([w_ih1.T, w_hh1.T], axis=0)   # (D_in+H1, 4H1)
    w2 = jnp.concatenate([w_ih2.T, w_hh2.T], axis=0)   # (H1+H2,  4H2)

    return {
        "w1": w1.astype(jnp.bfloat16),
        "b1": (b_ih1 + b_hh1).reshape(1, -1),           # (1, 4H1) f32
        "w2": w2.astype(jnp.bfloat16),
        "b2": (b_ih2 + b_hh2).reshape(1, -1),           # (1, 4H2) f32
        "w_fc": w_fc.T.astype(jnp.bfloat16),            # (H2, O)
        "b_fc": b_fc.reshape(1, -1),                    # (1, O)  f32
    }


if __name__ == "__main__":
    key = jax.random.PRNGKey(0)
    kx, kp = jax.random.split(key)

    batch, seq_len = 2, 8
    x = jax.random.normal(kx, (batch, seq_len, INPUT_DIM), dtype=jnp.float32)
    params = init_params(kp)

    out = seq2seq_forward(x, params)
    out = jax.block_until_ready(out)
    assert out.shape == (batch, NUM_TIMESTEPS, OUTPUT_DIM), out.shape
    assert bool(jnp.all(jnp.isfinite(out)))
    print("KERNEL_OK")
</pallas_src>

<mosaic_0001>
module attributes {stable_mosaic.version = 11 : i64} {
  func.func @seq2seq_kernel(%arg0: i32, %arg1: memref<8x8x15xf32, #tpu.memory_space<vmem>>, %arg2: memref<47x128xbf16, #tpu.memory_space<vmem>>, %arg3: memref<1x128xf32, #tpu.memory_space<vmem>>, %arg4: memref<44x48xbf16, #tpu.memory_space<vmem>>, %arg5: memref<1x48xf32, #tpu.memory_space<vmem>>, %arg6: memref<12x6xbf16, #tpu.memory_space<vmem>>, %arg7: memref<1x6xf32, #tpu.memory_space<vmem>>, %arg8: memref<8x18xf32, #tpu.memory_space<vmem>>) attributes {dimension_semantics = [#tpu.dimension_semantics<parallel>], iteration_bounds = array<i64: 1>, scalar_prefetch = 0 : i64, scratch_operands = 0 : i64, tpu.core_type = #tpu.core_type<tc>, window_params = [{transform_indices = @transform_0, window_bounds = array<i64: 8, 8, 15>}, {pipeline_mode = #tpu.pipeline_mode<synchronous>, transform_indices = @transform_1, window_bounds = array<i64: 47, 128>}, {pipeline_mode = #tpu.pipeline_mode<synchronous>, transform_indices = @transform_2, window_bounds = array<i64: 1, 128>}, {pipeline_mode = #tpu.pipeline_mode<synchronous>, transform_indices = @transform_3, window_bounds = array<i64: 44, 48>}, {pipeline_mode = #tpu.pipeline_mode<synchronous>, transform_indices = @transform_4, window_bounds = array<i64: 1, 48>}, {pipeline_mode = #tpu.pipeline_mode<synchronous>, transform_indices = @transform_5, window_bounds = array<i64: 12, 6>}, {pipeline_mode = #tpu.pipeline_mode<synchronous>, transform_indices = @transform_6, window_bounds = array<i64: 1, 6>}, {transform_indices = @transform_7, window_bounds = array<i64: 8, 18>}]} {
    %c0 = arith.constant 0 : index
    %c0_0 = arith.constant 0 : index
    %0 = vector.load %arg2[%c0, %c0_0] : memref<47x128xbf16, #tpu.memory_space<vmem>>, vector<47x128xbf16>
    %c0_1 = arith.constant 0 : index
    %c0_2 = arith.constant 0 : index
    %1 = vector.load %arg3[%c0_1, %c0_2] : memref<1x128xf32, #tpu.memory_space<vmem>>, vector<1x128xf32>
    %c0_3 = arith.constant 0 : index
    %c0_4 = arith.constant 0 : index
    %2 = vector.load %arg4[%c0_3, %c0_4] : memref<44x48xbf16, #tpu.memory_space<vmem>>, vector<44x48xbf16>
    %c0_5 = arith.constant 0 : index
    %c0_6 = arith.constant 0 : index
    %3 = vector.load %arg5[%c0_5, %c0_6] : memref<1x48xf32, #tpu.memory_space<vmem>>, vector<1x48xf32>
    %c0_7 = arith.constant 0 : index
    %c0_8 = arith.constant 0 : index
    %4 = vector.load %arg6[%c0_7, %c0_8] : memref<12x6xbf16, #tpu.memory_space<vmem>>, vector<12x6xbf16>
    %c0_9 = arith.constant 0 : index
    %c0_10 = arith.constant 0 : index
    %5 = vector.load %arg7[%c0_9, %c0_10] : memref<1x6xf32, #tpu.memory_space<vmem>>, vector<1x6xf32>
    %cst = arith.constant 0.000000e+00 : f32
    %6 = vector.broadcast %cst : f32 to vector<8x32xf32>
    %cst_11 = arith.constant 0.000000e+00 : f32
    %7 = vector.broadcast %cst_11 : f32 to vector<8x32xf32>
    %c0_12 = arith.constant 0 : index
    %c0_13 = arith.constant 0 : index
    %c0_14 = arith.constant 0 : index
    %8 = vector.load %arg1[%c0_12, %c0_13, %c0_14] : memref<8x8x15xf32, #tpu.memory_space<vmem>>, vector<8x1x15xf32>
    %9 = vector.shape_cast %8 : vector<8x1x15xf32> to vector<8x15xf32>
    %10 = tpu.concatenate %9, %6 in 1 : vector<8x15xf32>, vector<8x32xf32> -> vector<8x47xf32>
    %11 = arith.truncf %10 : vector<8x47xf32> to vector<8x47xbf16>
    %cst_15 = arith.constant dense<0.000000e+00> : vector<8x128xf32>
    %12 = tpu.matmul %11, %0, %cst_15 {dimension_numbers = #tpu.dot_dimension_numbers<[1], [0], [0], [1], [0, 0, 1, 1], [], []>} : vector<8x47xbf16>, vector<47x128xbf16>, vector<8x128xf32> -> vector<8x128xf32>
    %13 = vector.broadcast %1 : vector<1x128xf32> to vector<8x128xf32>
    %14 = arith.addf %12, %13 : vector<8x128xf32>
    %15 = vector.extract_strided_slice %14 {offsets = [0, 0], sizes = [8, 32], strides = [1, 1]} : vector<8x128xf32> to vector<8x32xf32>
    %cst_16 = arith.constant 5.000000e-01 : f32
    %16 = vector.broadcast %cst_16 : f32 to vector<8x32xf32>
    %17 = arith.mulf %16, %15 : vector<8x32xf32>
    %18 = math.tanh %17 : vector<8x32xf32>
    %cst_17 = arith.constant 5.000000e-01 : f32
    %19 = vector.broadcast %cst_17 : f32 to vector<8x32xf32>
    %20 = arith.mulf %19, %18 : vector<8x32xf32>
    %cst_18 = arith.constant 5.000000e-01 : f32
    %21 = vector.broadcast %cst_18 : f32 to vector<8x32xf32>
    %22 = arith.addf %20, %21 : vector<8x32xf32>
    %23 = vector.extract_strided_slice %14 {offsets = [0, 32], sizes = [8, 32], strides = [1, 1]} : vector<8x128xf32> to vector<8x32xf32>
    %cst_19 = arith.constant 5.000000e-01 : f32
    %24 = vector.broadcast %cst_19 : f32 to vector<8x32xf32>
    %25 = arith.mulf %24, %23 : vector<8x32xf32>
    %26 = math.tanh %25 : vector<8x32xf32>
    %cst_20 = arith.constant 5.000000e-01 : f32
    %27 = vector.broadcast %cst_20 : f32 to vector<8x32xf32>
    %28 = arith.mulf %27, %26 : vector<8x32xf32>
    %cst_21 = arith.constant 5.000000e-01 : f32
    %29 = vector.broadcast %cst_21 : f32 to vector<8x32xf32>
    %30 = arith.addf %28, %29 : vector<8x32xf32>
    %31 = vector.extract_strided_slice %14 {offsets = [0, 64], sizes = [8, 32], strides = [1, 1]} : vector<8x128xf32> to vector<8x32xf32>
    %32 = math.tanh %31 : vector<8x32xf32>
    %33 = vector.extract_strided_slice %14 {offsets = [0, 96], sizes = [8, 32], strides = [1, 1]} : vector<8x128xf32> to vector<8x32xf32>
    %cst_22 = arith.constant 5.000000e-01 : f32
    %34 = vector.broadcast %cst_22 : f32 to vector<8x32xf32>
    %35 = arith.mulf %34, %33 : vector<8x32xf32>
    %36 = math.tanh %35 : vector<8x32xf32>
    %cst_23 = arith.constant 5.000000e-01 : f32
    %37 = vector.broadcast %cst_23 : f32 to vector<8x32xf32>
    %38 = arith.mulf %37, %36 : vector<8x32xf32>
    %cst_24 = arith.constant 5.000000e-01 : f32
    %39 = vector.broadcast %cst_24 : f32 to vector<8x32xf32>
    %40 = arith.addf %38, %39 : vector<8x32xf32>
    %41 = arith.mulf %30, %7 : vector<8x32xf32>
    %42 = arith.mulf %22, %32 : vector<8x32xf32>
    %43 = arith.addf %41, %42 : vector<8x32xf32>
    %44 = math.tanh %43 : vector<8x32xf32>
    %45 = arith.mulf %40, %44 : vector<8x32xf32>
    %c0_25 = arith.constant 0 : index
    %c1 = arith.constant 1 : index
    %c0_26 = arith.constant 0 : index
    %46 = vector.load %arg1[%c0_25, %c1, %c0_26] : memref<8x8x15xf32, #tpu.memory_space<vmem>>, vector<8x1x15xf32>
    %47 = vector.shape_cast %46 : vector<8x1x15xf32> to vector<8x15xf32>
    %48 = tpu.concatenate %47, %45 in 1 : vector<8x15xf32>, vector<8x32xf32> -> vector<8x47xf32>
    %49 = arith.truncf %48 : vector<8x47xf32> to vector<8x47xbf16>
    %cst_27 = arith.constant dense<0.000000e+00> : vector<8x128xf32>
    %50 = tpu.matmul %49, %0, %cst_27 {dimension_numbers = #tpu.dot_dimension_numbers<[1], [0], [0], [1], [0, 0, 1, 1], [], []>} : vector<8x47xbf16>, vector<47x128xbf16>, vector<8x128xf32> -> vector<8x128xf32>
    %51 = vector.broadcast %1 : vector<1x128xf32> to vector<8x128xf32>
    %52 = arith.addf %50, %51 : vector<8x128xf32>
    %53 = vector.extract_strided_slice %52 {offsets = [0, 0], sizes = [8, 32], strides = [1, 1]} : vector<8x128xf32> to vector<8x32xf32>
    %cst_28 = arith.constant 5.000000e-01 : f32
    %54 = vector.broadcast %cst_28 : f32 to vector<8x32xf32>
    %55 = arith.mulf %54, %53 : vector<8x32xf32>
    %56 = math.tanh %55 : vector<8x32xf32>
    %cst_29 = arith.constant 5.000000e-01 : f32
    %57 = vector.broadcast %cst_29 : f32 to vector<8x32xf32>
    %58 = arith.mulf %57, %56 : vector<8x32xf32>
    %cst_30 = arith.constant 5.000000e-01 : f32
    %59 = vector.broadcast %cst_30 : f32 to vector<8x32xf32>
    %60 = arith.addf %58, %59 : vector<8x32xf32>
    %61 = vector.extract_strided_slice %52 {offsets = [0, 32], sizes = [8, 32], strides = [1, 1]} : vector<8x128xf32> to vector<8x32xf32>
    %cst_31 = arith.constant 5.000000e-01 : f32
    %62 = vector.broadcast %cst_31 : f32 to vector<8x32xf32>
    %63 = arith.mulf %62, %61 : vector<8x32xf32>
    %64 = math.tanh %63 : vector<8x32xf32>
    %cst_32 = arith.constant 5.000000e-01 : f32
    %65 = vector.broadcast %cst_32 : f32 to vector<8x32xf32>
    %66 = arith.mulf %65, %64 : vector<8x32xf32>
    %cst_33 = arith.constant 5.000000e-01 : f32
    %67 = vector.broadcast %cst_33 : f32 to vector<8x32xf32>
    %68 = arith.addf %66, %67 : vector<8x32xf32>
    %69 = vector.extract_strided_slice %52 {offsets = [0, 64], sizes = [8, 32], strides = [1, 1]} : vector<8x128xf32> to vector<8x32xf32>
    %70 = math.tanh %69 : vector<8x32xf32>
    %71 = vector.extract_strided_slice %52 {offsets = [0, 96], sizes = [8, 32], strides = [1, 1]} : vector<8x128xf32> to vector<8x32xf32>
    %cst_34 = arith.constant 5.000000e-01 : f32
    %72 = vector.broadcast %cst_34 : f32 to vector<8x32xf32>
    %73 = arith.mulf %72, %71 : vector<8x32xf32>
    %74 = math.tanh %73 : vector<8x32xf32>
    %cst_35 = arith.constant 5.000000e-01 : f32
    %75 = vector.broadcast %cst_35 : f32 to vector<8x32xf32>
    %76 = arith.mulf %75, %74 : vector<8x32xf32>
    %cst_36 = arith.constant 5.000000e-01 : f32
    %77 = vector.broadcast %cst_36 : f32 to vector<8x32xf32>
    %78 = arith.addf %76, %77 : vector<8x32xf32>
    %79 = arith.mulf %68, %43 : vector<8x32xf32>
    %80 = arith.mulf %60, %70 : vector<8x32xf32>
    %81 = arith.addf %79, %80 : vector<8x32xf32>
    %82 = math.tanh %81 : vector<8x32xf32>
    %83 = arith.mulf %78, %82 : vector<8x32xf32>
    %c0_37 = arith.constant 0 : index
    %c2 = arith.constant 2 : index
    %c0_38 = arith.constant 0 : index
    %84 = vector.load %arg1[%c0_37, %c2, %c0_38] : memref<8x8x15xf32, #tpu.memory_space<vmem>>, vector<8x1x15xf32>
    %85 = vector.shape_cast %84 : vector<8x1x15xf32> to vector<8x15xf32>
    %86 = tpu.concatenate %85, %83 in 1 : vector<8x15xf32>, vector<8x32xf32> -> vector<8x47xf32>
    %87 = arith.truncf %86 : vector<8x47xf32> to vector<8x47xbf16>
    %cst_39 = arith.constant dense<0.000000e+00> : vector<8x128xf32>
    %88 = tpu.matmul %87, %0, %cst_39 {dimension_numbers = #tpu.dot_dimension_numbers<[1], [0], [0], [1], [0, 0, 1, 1], [], []>} : vector<8x47xbf16>, vector<47x128xbf16>, vector<8x128xf32> -> vector<8x128xf32>
    %89 = vector.broadcast %1 : vector<1x128xf32> to vector<8x128xf32>
    %90 = arith.addf %88, %89 : vector<8x128xf32>
    %91 = vector.extract_strided_slice %90 {offsets = [0, 0], sizes = [8, 32], strides = [1, 1]} : vector<8x128xf32> to vector<8x32xf32>
    %cst_40 = arith.constant 5.000000e-01 : f32
    %92 = vector.broadcast %cst_40 : f32 to vector<8x32xf32>
    %93 = arith.mulf %92, %91 : vector<8x32xf32>
    %94 = math.tanh %93 : vector<8x32xf32>
    %cst_41 = arith.constant 5.000000e-01 : f32
    %95 = vector.broadcast %cst_41 : f32 to vector<8x32xf32>
    %96 = arith.mulf %95, %94 : vector<8x32xf32>
    %cst_42 = arith.constant 5.000000e-01 : f32
    %97 = vector.broadcast %cst_42 : f32 to vector<8x32xf32>
    %98 = arith.addf %96, %97 : vector<8x32xf32>
    %99 = vector.extract_strided_slice %90 {offsets = [0, 32], sizes = [8, 32], strides = [1, 1]} : vector<8x128xf32> to vector<8x32xf32>
    %cst_43 = arith.constant 5.000000e-01 : f32
    %100 = vector.broadcast %cst_43 : f32 to vector<8x32xf32>
    %101 = arith.mulf %100, %99 : vector<8x32xf32>
    %102 = math.tanh %101 : vector<8x32xf32>
    %cst_44 = arith.constant 5.000000e-01 : f32
    %103 = vector.broadcast %cst_44 : f32 to vector<8x32xf32>
    %104 = arith.mulf %103, %102 : vector<8x32xf32>
    %cst_45 = arith.constant 5.000000e-01 : f32
    %105 = vector.broadcast %cst_45 : f32 to vector<8x32xf32>
    %106 = arith.addf %104, %105 : vector<8x32xf32>
    %107 = vector.extract_strided_slice %90 {offsets = [0, 64], sizes = [8, 32], strides = [1, 1]} : vector<8x128xf32> to vector<8x32xf32>
    %108 = math.tanh %107 : vector<8x32xf32>
    %109 = vector.extract_strided_slice %90 {offsets = [0, 96], sizes = [8, 32], strides = [1, 1]} : vector<8x128xf32> to vector<8x32xf32>
    %cst_46 = arith.constant 5.000000e-01 : f32
    %110 = vector.broadcast %cst_46 : f32 to vector<8x32xf32>
    %111 = arith.mulf %110, %109 : vector<8x32xf32>
    %112 = math.tanh %111 : vector<8x32xf32>
    %cst_47 = arith.constant 5.000000e-01 : f32
    %113 = vector.broadcast %cst_47 : f32 to vector<8x32xf32>
    %114 = arith.mulf %113, %112 : vector<8x32xf32>
    %cst_48 = arith.constant 5.000000e-01 : f32
    %115 = vector.broadcast %cst_48 : f32 to vector<8x32xf32>
    %116 = arith.addf %114, %115 : vector<8x32xf32>
    %117 = arith.mulf %106, %81 : vector<8x32xf32>
    %118 = arith.mulf %98, %108 : vector<8x32xf32>
    %119 = arith.addf %117, %118 : vector<8x32xf32>
    %120 = math.tanh %119 : vector<8x32xf32>
    %121 = arith.mulf %116, %120 : vector<8x32xf32>
    %c0_49 = arith.constant 0 : index
    %c3 = arith.constant 3 : index
    %c0_50 = arith.constant 0 : index
    %122 = vector.load %arg1[%c0_49, %c3, %c0_50] : memref<8x8x15xf32, #tpu.memory_space<vmem>>, vector<8x1x15xf32>
    %123 = vector.shape_cast %122 : vector<8x1x15xf32> to vector<8x15xf32>
    %124 = tpu.concatenate %123, %121 in 1 : vector<8x15xf32>, vector<8x32xf32> -> vector<8x47xf32>
    %125 = arith.truncf %124 : vector<8x47xf32> to vector<8x47xbf16>
    %cst_51 = arith.constant dense<0.000000e+00> : vector<8x128xf32>
    %126 = tpu.matmul %125, %0, %cst_51 {dimension_numbers = #tpu.dot_dimension_numbers<[1], [0], [0], [1], [0, 0, 1, 1], [], []>} : vector<8x47xbf16>, vector<47x128xbf16>, vector<8x128xf32> -> vector<8x128xf32>
    %127 = vector.broadcast %1 : vector<1x128xf32> to vector<8x128xf32>
    %128 = arith.addf %126, %127 : vector<8x128xf32>
    %129 = vector.extract_strided_slice %128 {offsets = [0, 0], sizes = [8, 32], strides = [1, 1]} : vector<8x128xf32> to vector<8x32xf32>
    %cst_52 = arith.constant 5.000000e-01 : f32
    %130 = vector.broadcast %cst_52 : f32 to vector<8x32xf32>
    %131 = arith.mulf %130, %129 : vector<8x32xf32>
    %132 = math.tanh %131 : vector<8x32xf32>
    %cst_53 = arith.constant 5.000000e-01 : f32
    %133 = vector.broadcast %cst_53 : f32 to vector<8x32xf32>
    %134 = arith.mulf %133, %132 : vector<8x32xf32>
    %cst_54 = arith.constant 5.000000e-01 : f32
    %135 = vector.broadcast %cst_54 : f32 to vector<8x32xf32>
    %136 = arith.addf %134, %135 : vector<8x32xf32>
    %137 = vector.extract_strided_slice %128 {offsets = [0, 32], sizes = [8, 32], strides = [1, 1]} : vector<8x128xf32> to vector<8x32xf32>
    %cst_55 = arith.constant 5.000000e-01 : f32
    %138 = vector.broadcast %cst_55 : f32 to vector<8x32xf32>
    %139 = arith.mulf %138, %137 : vector<8x32xf32>
    %140 = math.tanh %139 : vector<8x32xf32>
    %cst_56 = arith.constant 5.000000e-01 : f32
    %141 = vector.broadcast %cst_56 : f32 to vector<8x32xf32>
    %142 = arith.mulf %141, %140 : vector<8x32xf32>
    %cst_57 = arith.constant 5.000000e-01 : f32
    %143 = vector.broadcast %cst_57 : f32 to vector<8x32xf32>
    %144 = arith.addf %142, %143 : vector<8x32xf32>
    %145 = vector.extract_strided_slice %128 {offsets = [0, 64], sizes = [8, 32], strides = [1, 1]} : vector<8x128xf32> to vector<8x32xf32>
    %146 = math.tanh %145 : vector<8x32xf32>
    %147 = vector.extract_strided_slice %128 {offsets = [0, 96], sizes = [8, 32], strides = [1, 1]} : vector<8x128xf32> to vector<8x32xf32>
    %cst_58 = arith.constant 5.000000e-01 : f32
    %148 = vector.broadcast %cst_58 : f32 to vector<8x32xf32>
    %149 = arith.mulf %148, %147 : vector<8x32xf32>
    %150 = math.tanh %149 : vector<8x32xf32>
    %cst_59 = arith.constant 5.000000e-01 : f32
    %151 = vector.broadcast %cst_59 : f32 to vector<8x32xf32>
    %152 = arith.mulf %151, %150 : vector<8x32xf32>
    %cst_60 = arith.constant 5.000000e-01 : f32
    %153 = vector.broadcast %cst_60 : f32 to vector<8x32xf32>
    %154 = arith.addf %152, %153 : vector<8x32xf32>
    %155 = arith.mulf %144, %119 : vector<8x32xf32>
    %156 = arith.mulf %136, %146 : vector<8x32xf32>
    %157 = arith.addf %155, %156 : vector<8x32xf32>
    %158 = math.tanh %157 : vector<8x32xf32>
    %159 = arith.mulf %154, %158 : vector<8x32xf32>
    %c0_61 = arith.constant 0 : index
    %c4 = arith.constant 4 : index
    %c0_62 = arith.constant 0 : index
    %160 = vector.load %arg1[%c0_61, %c4, %c0_62] : memref<8x8x15xf32, #tpu.memory_space<vmem>>, vector<8x1x15xf32>
    %161 = vector.shape_cast %160 : vector<8x1x15xf32> to vector<8x15xf32>
    %162 = tpu.concatenate %161, %159 in 1 : vector<8x15xf32>, vector<8x32xf32> -> vector<8x47xf32>
    %163 = arith.truncf %162 : vector<8x47xf32> to vector<8x47xbf16>
    %cst_63 = arith.constant dense<0.000000e+00> : vector<8x128xf32>
    %164 = tpu.matmul %163, %0, %cst_63 {dimension_numbers = #tpu.dot_dimension_numbers<[1], [0], [0], [1], [0, 0, 1, 1], [], []>} : vector<8x47xbf16>, vector<47x128xbf16>, vector<8x128xf32> -> vector<8x128xf32>
    %165 = vector.broadcast %1 : vector<1x128xf32> to vector<8x128xf32>
    %166 = arith.addf %164, %165 : vector<8x128xf32>
    %167 = vector.extract_strided_slice %166 {offsets = [0, 0], sizes = [8, 32], strides = [1, 1]} : vector<8x128xf32> to vector<8x32xf32>
    %cst_64 = arith.constant 5.000000e-01 : f32
    %168 = vector.broadcast %cst_64 : f32 to vector<8x32xf32>
    %169 = arith.mulf %168, %167 : vector<8x32xf32>
    %170 = math.tanh %169 : vector<8x32xf32>
    %cst_65 = arith.constant 5.000000e-01 : f32
    %171 = vector.broadcast %cst_65 : f32 to vector<8x32xf32>
    %172 = arith.mulf %171, %170 : vector<8x32xf32>
    %cst_66 = arith.constant 5.000000e-01 : f32
    %173 = vector.broadcast %cst_66 : f32 to vector<8x32xf32>
    %174 = arith.addf %172, %173 : vector<8x32xf32>
    %175 = vector.extract_strided_slice %166 {offsets = [0, 32], sizes = [8, 32], strides = [1, 1]} : vector<8x128xf32> to vector<8x32xf32>
    %cst_67 = arith.constant 5.000000e-01 : f32
    %176 = vector.broadcast %cst_67 : f32 to vector<8x32xf32>
    %177 = arith.mulf %176, %175 : vector<8x32xf32>
    %178 = math.tanh %177 : vector<8x32xf32>
    %cst_68 = arith.constant 5.000000e-01 : f32
    %179 = vector.broadcast %cst_68 : f32 to vector<8x32xf32>
    %180 = arith.mulf %179, %178 : vector<8x32xf32>
    %cst_69 = arith.constant 5.000000e-01 : f32
    %181 = vector.broadcast %cst_69 : f32 to vector<8x32xf32>
    %182 = arith.addf %180, %181 : vector<8x32xf32>
    %183 = vector.extract_strided_slice %166 {offsets = [0, 64], sizes = [8, 32], strides = [1, 1]} : vector<8x128xf32> to vector<8x32xf32>
    %184 = math.tanh %183 : vector<8x32xf32>
    %185 = vector.extract_strided_slice %166 {offsets = [0, 96], sizes = [8, 32], strides = [1, 1]} : vector<8x128xf32> to vector<8x32xf32>
    %cst_70 = arith.constant 5.000000e-01 : f32
    %186 = vector.broadcast %cst_70 : f32 to vector<8x32xf32>
    %187 = arith.mulf %186, %185 : vector<8x32xf32>
    %188 = math.tanh %187 : vector<8x32xf32>
    %cst_71 = arith.constant 5.000000e-01 : f32
    %189 = vector.broadcast %cst_71 : f32 to vector<8x32xf32>
    %190 = arith.mulf %189, %188 : vector<8x32xf32>
    %cst_72 = arith.constant 5.000000e-01 : f32
    %191 = vector.broadcast %cst_72 : f32 to vector<8x32xf32>
    %192 = arith.addf %190, %191 : vector<8x32xf32>
    %193 = arith.mulf %182, %157 : vector<8x32xf32>
    %194 = arith.mulf %174, %184 : vector<8x32xf32>
    %195 = arith.addf %193, %194 : vector<8x32xf32>
    %196 = math.tanh %195 : vector<8x32xf32>
    %197 = arith.mulf %192, %196 : vector<8x32xf32>
    %c0_73 = arith.constant 0 : index
    %c5 = arith.constant 5 : index
    %c0_74 = arith.constant 0 : index
    %198 = vector.load %arg1[%c0_73, %c5, %c0_74] : memref<8x8x15xf32, #tpu.memory_space<vmem>>, vector<8x1x15xf32>
    %199 = vector.shape_cast %198 : vector<8x1x15xf32> to vector<8x15xf32>
    %200 = tpu.concatenate %199, %197 in 1 : vector<8x15xf32>, vector<8x32xf32> -> vector<8x47xf32>
    %201 = arith.truncf %200 : vector<8x47xf32> to vector<8x47xbf16>
    %cst_75 = arith.constant dense<0.000000e+00> : vector<8x128xf32>
    %202 = tpu.matmul %201, %0, %cst_75 {dimension_numbers = #tpu.dot_dimension_numbers<[1], [0], [0], [1], [0, 0, 1, 1], [], []>} : vector<8x47xbf16>, vector<47x128xbf16>, vector<8x128xf32> -> vector<8x128xf32>
    %203 = vector.broadcast %1 : vector<1x128xf32> to vector<8x128xf32>
    %204 = arith.addf %202, %203 : vector<8x128xf32>
    %205 = vector.extract_strided_slice %204 {offsets = [0, 0], sizes = [8, 32], strides = [1, 1]} : vector<8x128xf32> to vector<8x32xf32>
    %cst_76 = arith.constant 5.000000e-01 : f32
    %206 = vector.broadcast %cst_76 : f32 to vector<8x32xf32>
    %207 = arith.mulf %206, %205 : vector<8x32xf32>
    %208 = math.tanh %207 : vector<8x32xf32>
    %cst_77 = arith.constant 5.000000e-01 : f32
    %209 = vector.broadcast %cst_77 : f32 to vector<8x32xf32>
    %210 = arith.mulf %209, %208 : vector<8x32xf32>
    %cst_78 = arith.constant 5.000000e-01 : f32
    %211 = vector.broadcast %cst_78 : f32 to vector<8x32xf32>
    %212 = arith.addf %210, %211 : vector<8x32xf32>
    %213 = vector.extract_strided_slice %204 {offsets = [0, 32], sizes = [8, 32], strides = [1, 1]} : vector<8x128xf32> to vector<8x32xf32>
    %cst_79 = arith.constant 5.000000e-01 : f32
    %214 = vector.broadcast %cst_79 : f32 to vector<8x32xf32>
    %215 = arith.mulf %214, %213 : vector<8x32xf32>
    %216 = math.tanh %215 : vector<8x32xf32>
    %cst_80 = arith.constant 5.000000e-01 : f32
    %217 = vector.broadcast %cst_80 : f32 to vector<8x32xf32>
    %218 = arith.mulf %217, %216 : vector<8x32xf32>
    %cst_81 = arith.constant 5.000000e-01 : f32
    %219 = vector.broadcast %cst_81 : f32 to vector<8x32xf32>
    %220 = arith.addf %218, %219 : vector<8x32xf32>
    %221 = vector.extract_strided_slice %204 {offsets = [0, 64], sizes = [8, 32], strides = [1, 1]} : vector<8x128xf32> to vector<8x32xf32>
    %222 = math.tanh %221 : vector<8x32xf32>
    %223 = vector.extract_strided_slice %204 {offsets = [0, 96], sizes = [8, 32], strides = [1, 1]} : vector<8x128xf32> to vector<8x32xf32>
    %cst_82 = arith.constant 5.000000e-01 : f32
    %224 = vector.broadcast %cst_82 : f32 to vector<8x32xf32>
    %225 = arith.mulf %224, %223 : vector<8x32xf32>
    %226 = math.tanh %225 : vector<8x32xf32>
    %cst_83 = arith.constant 5.000000e-01 : f32
    %227 = vector.broadcast %cst_83 : f32 to vector<8x32xf32>
    %228 = arith.mulf %227, %226 : vector<8x32xf32>
    %cst_84 = arith.constant 5.000000e-01 : f32
    %229 = vector.broadcast %cst_84 : f32 to vector<8x32xf32>
    %230 = arith.addf %228, %229 : vector<8x32xf32>
    %231 = arith.mulf %220, %195 : vector<8x32xf32>
    %232 = arith.mulf %212, %222 : vector<8x32xf32>
    %233 = arith.addf %231, %232 : vector<8x32xf32>
    %234 = math.tanh %233 : vector<8x32xf32>
    %235 = arith.mulf %230, %234 : vector<8x32xf32>
    %c0_85 = arith.constant 0 : index
    %c6 = arith.constant 6 : index
    %c0_86 = arith.constant 0 : index
    %236 = vector.load %arg1[%c0_85, %c6, %c0_86] : memref<8x8x15xf32, #tpu.memory_space<vmem>>, vector<8x1x15xf32>
    %237 = vector.shape_cast %236 : vector<8x1x15xf32> to vector<8x15xf32>
    %238 = tpu.concatenate %237, %235 in 1 : vector<8x15xf32>, vector<8x32xf32> -> vector<8x47xf32>
    %239 = arith.truncf %238 : vector<8x47xf32> to vector<8x47xbf16>
    %cst_87 = arith.constant dense<0.000000e+00> : vector<8x128xf32>
    %240 = tpu.matmul %239, %0, %cst_87 {dimension_numbers = #tpu.dot_dimension_numbers<[1], [0], [0], [1], [0, 0, 1, 1], [], []>} : vector<8x47xbf16>, vector<47x128xbf16>, vector<8x128xf32> -> vector<8x128xf32>
    %241 = vector.broadcast %1 : vector<1x128xf32> to vector<8x128xf32>
    %242 = arith.addf %240, %241 : vector<8x128xf32>
    %243 = vector.extract_strided_slice %242 {offsets = [0, 0], sizes = [8, 32], strides = [1, 1]} : vector<8x128xf32> to vector<8x32xf32>
    %cst_88 = arith.constant 5.000000e-01 : f32
    %244 = vector.broadcast %cst_88 : f32 to vector<8x32xf32>
    %245 = arith.mulf %244, %243 : vector<8x32xf32>
    %246 = math.tanh %245 : vector<8x32xf32>
    %cst_89 = arith.constant 5.000000e-01 : f32
    %247 = vector.broadcast %cst_89 : f32 to vector<8x32xf32>
    %248 = arith.mulf %247, %246 : vector<8x32xf32>
    %cst_90 = arith.constant 5.000000e-01 : f32
    %249 = vector.broadcast %cst_90 : f32 to vector<8x32xf32>
    %250 = arith.addf %248, %249 : vector<8x32xf32>
    %251 = vector.extract_strided_slice %242 {offsets = [0, 32], sizes = [8, 32], strides = [1, 1]} : vector<8x128xf32> to vector<8x32xf32>
    %cst_91 = arith.constant 5.000000e-01 : f32
    %252 = vector.broadcast %cst_91 : f32 to vector<8x32xf32>
    %253 = arith.mulf %252, %251 : vector<8x32xf32>
    %254 = math.tanh %253 : vector<8x32xf32>
    %cst_92 = arith.constant 5.000000e-01 : f32
    %255 = vector.broadcast %cst_92 : f32 to vector<8x32xf32>
    %256 = arith.mulf %255, %254 : vector<8x32xf32>
    %cst_93 = arith.constant 5.000000e-01 : f32
    %257 = vector.broadcast %cst_93 : f32 to vector<8x32xf32>
    %258 = arith.addf %256, %257 : vector<8x32xf32>
    %259 = vector.extract_strided_slice %242 {offsets = [0, 64], sizes = [8, 32], strides = [1, 1]} : vector<8x128xf32> to vector<8x32xf32>
    %260 = math.tanh %259 : vector<8x32xf32>
    %261 = vector.extract_strided_slice %242 {offsets = [0, 96], sizes = [8, 32], strides = [1, 1]} : vector<8x128xf32> to vector<8x32xf32>
    %cst_94 = arith.constant 5.000000e-01 : f32
    %262 = vector.broadcast %cst_94 : f32 to vector<8x32xf32>
    %263 = arith.mulf %262, %261 : vector<8x32xf32>
    %264 = math.tanh %263 : vector<8x32xf32>
    %cst_95 = arith.constant 5.000000e-01 : f32
    %265 = vector.broadcast %cst_95 : f32 to vector<8x32xf32>
    %266 = arith.mulf %265, %264 : vector<8x32xf32>
    %cst_96 = arith.constant 5.000000e-01 : f32
    %267 = vector.broadcast %cst_96 : f32 to vector<8x32xf32>
    %268 = arith.addf %266, %267 : vector<8x32xf32>
    %269 = arith.mulf %258, %233 : vector<8x32xf32>
    %270 = arith.mulf %250, %260 : vector<8x32xf32>
    %271 = arith.addf %269, %270 : vector<8x32xf32>
    %272 = math.tanh %271 : vector<8x32xf32>
    %273 = arith.mulf %268, %272 : vector<8x32xf32>
    %c0_97 = arith.constant 0 : index
    %c7 = arith.constant 7 : index
    %c0_98 = arith.constant 0 : index
    %274 = vector.load %arg1[%c0_97, %c7, %c0_98] : memref<8x8x15xf32, #tpu.memory_space<vmem>>, vector<8x1x15xf32>
    %275 = vector.shape_cast %274 : vector<8x1x15xf32> to vector<8x15xf32>
    %276 = tpu.concatenate %275, %273 in 1 : vector<8x15xf32>, vector<8x32xf32> -> vector<8x47xf32>
    %277 = arith.truncf %276 : vector<8x47xf32> to vector<8x47xbf16>
    %cst_99 = arith.constant dense<0.000000e+00> : vector<8x128xf32>
    %278 = tpu.matmul %277, %0, %cst_99 {dimension_numbers = #tpu.dot_dimension_numbers<[1], [0], [0], [1], [0, 0, 1, 1], [], []>} : vector<8x47xbf16>, vector<47x128xbf16>, vector<8x128xf32> -> vector<8x128xf32>
    %279 = vector.broadcast %1 : vector<1x128xf32> to vector<8x128xf32>
    %280 = arith.addf %278, %279 : vector<8x128xf32>
    %281 = vector.extract_strided_slice %280 {offsets = [0, 0], sizes = [8, 32], strides = [1, 1]} : vector<8x128xf32> to vector<8x32xf32>
    %cst_100 = arith.constant 5.000000e-01 : f32
    %282 = vector.broadcast %cst_100 : f32 to vector<8x32xf32>
    %283 = arith.mulf %282, %281 : vector<8x32xf32>
    %284 = math.tanh %283 : vector<8x32xf32>
    %cst_101 = arith.constant 5.000000e-01 : f32
    %285 = vector.broadcast %cst_101 : f32 to vector<8x32xf32>
    %286 = arith.mulf %285, %284 : vector<8x32xf32>
    %cst_102 = arith.constant 5.000000e-01 : f32
    %287 = vector.broadcast %cst_102 : f32 to vector<8x32xf32>
    %288 = arith.addf %286, %287 : vector<8x32xf32>
    %289 = vector.extract_strided_slice %280 {offsets = [0, 32], sizes = [8, 32], strides = [1, 1]} : vector<8x128xf32> to vector<8x32xf32>
    %cst_103 = arith.constant 5.000000e-01 : f32
    %290 = vector.broadcast %cst_103 : f32 to vector<8x32xf32>
    %291 = arith.mulf %290, %289 : vector<8x32xf32>
    %292 = math.tanh %291 : vector<8x32xf32>
    %cst_104 = arith.constant 5.000000e-01 : f32
    %293 = vector.broadcast %cst_104 : f32 to vector<8x32xf32>
    %294 = arith.mulf %293, %292 : vector<8x32xf32>
    %cst_105 = arith.constant 5.000000e-01 : f32
    %295 = vector.broadcast %cst_105 : f32 to vector<8x32xf32>
    %296 = arith.addf %294, %295 : vector<8x32xf32>
    %297 = vector.extract_strided_slice %280 {offsets = [0, 64], sizes = [8, 32], strides = [1, 1]} : vector<8x128xf32> to vector<8x32xf32>
    %298 = math.tanh %297 : vector<8x32xf32>
    %299 = vector.extract_strided_slice %280 {offsets = [0, 96], sizes = [8, 32], strides = [1, 1]} : vector<8x128xf32> to vector<8x32xf32>
    %cst_106 = arith.constant 5.000000e-01 : f32
    %300 = vector.broadcast %cst_106 : f32 to vector<8x32xf32>
    %301 = arith.mulf %300, %299 : vector<8x32xf32>
    %302 = math.tanh %301 : vector<8x32xf32>
    %cst_107 = arith.constant 5.000000e-01 : f32
    %303 = vector.broadcast %cst_107 : f32 to vector<8x32xf32>
    %304 = arith.mulf %303, %302 : vector<8x32xf32>
    %cst_108 = arith.constant 5.000000e-01 : f32
    %305 = vector.broadcast %cst_108 : f32 to vector<8x32xf32>
    %306 = arith.addf %304, %305 : vector<8x32xf32>
    %307 = arith.mulf %296, %271 : vector<8x32xf32>
    %308 = arith.mulf %288, %298 : vector<8x32xf32>
    %309 = arith.addf %307, %308 : vector<8x32xf32>
    %310 = math.tanh %309 : vector<8x32xf32>
    %311 = arith.mulf %306, %310 : vector<8x32xf32>
    %cst_109 = arith.constant 0.000000e+00 : f32
    %312 = vector.broadcast %cst_109 : f32 to vector<8x12xf32>
    %cst_110 = arith.constant 0.000000e+00 : f32
    %313 = vector.broadcast %cst_110 : f32 to vector<8x12xf32>
    %314 = tpu.concatenate %311, %312 in 1 : vector<8x32xf32>, vector<8x12xf32> -> vector<8x44xf32>
    %315 = arith.truncf %314 : vector<8x44xf32> to vector<8x44xbf16>
    %cst_111 = arith.constant dense<0.000000e+00> : vector<8x48xf32>
    %316 = tpu.matmul %315, %2, %cst_111 {dimension_numbers = #tpu.dot_dimension_numbers<[1], [0], [0], [1], [0, 0, 1, 1], [], []>} : vector<8x44xbf16>, vector<44x48xbf16>, vector<8x48xf32> -> vector<8x48xf32>
    %317 = vector.broadcast %3 : vector<1x48xf32> to vector<8x48xf32>
    %318 = arith.addf %316, %317 : vector<8x48xf32>
    %319 = vector.extract_strided_slice %318 {offsets = [0, 0], sizes = [8, 12], strides = [1, 1]} : vector<8x48xf32> to vector<8x12xf32>
    %cst_112 = arith.constant 5.000000e-01 : f32
    %320 = vector.broadcast %cst_112 : f32 to vector<8x12xf32>
    %321 = arith.mulf %320, %319 : vector<8x12xf32>
    %322 = math.tanh %321 : vector<8x12xf32>
    %cst_113 = arith.constant 5.000000e-01 : f32
    %323 = vector.broadcast %cst_113 : f32 to vector<8x12xf32>
    %324 = arith.mulf %323, %322 : vector<8x12xf32>
    %cst_114 = arith.constant 5.000000e-01 : f32
    %325 = vector.broadcast %cst_114 : f32 to vector<8x12xf32>
    %326 = arith.addf %324, %325 : vector<8x12xf32>
    %327 = vector.extract_strided_slice %318 {offsets = [0, 12], sizes = [8, 12], strides = [1, 1]} : vector<8x48xf32> to vector<8x12xf32>
    %cst_115 = arith.constant 5.000000e-01 : f32
    %328 = vector.broadcast %cst_115 : f32 to vector<8x12xf32>
    %329 = arith.mulf %328, %327 : vector<8x12xf32>
    %330 = math.tanh %329 : vector<8x12xf32>
    %cst_116 = arith.constant 5.000000e-01 : f32
    %331 = vector.broadcast %cst_116 : f32 to vector<8x12xf32>
    %332 = arith.mulf %331, %330 : vector<8x12xf32>
    %cst_117 = arith.constant 5.000000e-01 : f32
    %333 = vector.broadcast %cst_117 : f32 to vector<8x12xf32>
    %334 = arith.addf %332, %333 : vector<8x12xf32>
    %335 = vector.extract_strided_slice %318 {offsets = [0, 24], sizes = [8, 12], strides = [1, 1]} : vector<8x48xf32> to vector<8x12xf32>
    %336 = math.tanh %335 : vector<8x12xf32>
    %337 = vector.extract_strided_slice %318 {offsets = [0, 36], sizes = [8, 12], strides = [1, 1]} : vector<8x48xf32> to vector<8x12xf32>
    %cst_118 = arith.constant 5.000000e-01 : f32
    %338 = vector.broadcast %cst_118 : f32 to vector<8x12xf32>
    %339 = arith.mulf %338, %337 : vector<8x12xf32>
    %340 = math.tanh %339 : vector<8x12xf32>
    %cst_119 = arith.constant 5.000000e-01 : f32
    %341 = vector.broadcast %cst_119 : f32 to vector<8x12xf32>
    %342 = arith.mulf %341, %340 : vector<8x12xf32>
    %cst_120 = arith.constant 5.000000e-01 : f32
    %343 = vector.broadcast %cst_120 : f32 to vector<8x12xf32>
    %344 = arith.addf %342, %343 : vector<8x12xf32>
    %345 = arith.mulf %334, %313 : vector<8x12xf32>
    %346 = arith.mulf %326, %336 : vector<8x12xf32>
    %347 = arith.addf %345, %346 : vector<8x12xf32>
    %348 = math.tanh %347 : vector<8x12xf32>
    %349 = arith.mulf %344, %348 : vector<8x12xf32>
    %350 = arith.truncf %349 : vector<8x12xf32> to vector<8x12xbf16>
    %cst_121 = arith.constant dense<0.000000e+00> : vector<8x6xf32>
    %351 = tpu.matmul %350, %4, %cst_121 {dimension_numbers = #tpu.dot_dimension_numbers<[1], [0], [0], [1], [0, 0, 1, 1], [], []>} : vector<8x12xbf16>, vector<12x6xbf16>, vector<8x6xf32> -> vector<8x6xf32>
    %352 = vector.broadcast %5 : vector<1x6xf32> to vector<8x6xf32>
    %353 = arith.addf %351, %352 : vector<8x6xf32>
    %354 = tpu.concatenate %311, %349 in 1 : vector<8x32xf32>, vector<8x12xf32> -> vector<8x44xf32>
    %355 = arith.truncf %354 : vector<8x44xf32> to vector<8x44xbf16>
    %cst_122 = arith.constant dense<0.000000e+00> : vector<8x48xf32>
    %356 = tpu.matmul %355, %2, %cst_122 {dimension_numbers = #tpu.dot_dimension_numbers<[1], [0], [0], [1], [0, 0, 1, 1], [], []>} : vector<8x44xbf16>, vector<44x48xbf16>, vector<8x48xf32> -> vector<8x48xf32>
    %357 = vector.broadcast %3 : vector<1x48xf32> to vector<8x48xf32>
    %358 = arith.addf %356, %357 : vector<8x48xf32>
    %359 = vector.extract_strided_slice %358 {offsets = [0, 0], sizes = [8, 12], strides = [1, 1]} : vector<8x48xf32> to vector<8x12xf32>
    %cst_123 = arith.constant 5.000000e-01 : f32
    %360 = vector.broadcast %cst_123 : f32 to vector<8x12xf32>
    %361 = arith.mulf %360, %359 : vector<8x12xf32>
    %362 = math.tanh %361 : vector<8x12xf32>
    %cst_124 = arith.constant 5.000000e-01 : f32
    %363 = vector.broadcast %cst_124 : f32 to vector<8x12xf32>
    %364 = arith.mulf %363, %362 : vector<8x12xf32>
    %cst_125 = arith.constant 5.000000e-01 : f32
    %365 = vector.broadcast %cst_125 : f32 to vector<8x12xf32>
    %366 = arith.addf %364, %365 : vector<8x12xf32>
    %367 = vector.extract_strided_slice %358 {offsets = [0, 12], sizes = [8, 12], strides = [1, 1]} : vector<8x48xf32> to vector<8x12xf32>
    %cst_126 = arith.constant 5.000000e-01 : f32
    %368 = vector.broadcast %cst_126 : f32 to vector<8x12xf32>
    %369 = arith.mulf %368, %367 : vector<8x12xf32>
    %370 = math.tanh %369 : vector<8x12xf32>
    %cst_127 = arith.constant 5.000000e-01 : f32
    %371 = vector.broadcast %cst_127 : f32 to vector<8x12xf32>
    %372 = arith.mulf %371, %370 : vector<8x12xf32>
    %cst_128 = arith.constant 5.000000e-01 : f32
    %373 = vector.broadcast %cst_128 : f32 to vector<8x12xf32>
    %374 = arith.addf %372, %373 : vector<8x12xf32>
    %375 = vector.extract_strided_slice %358 {offsets = [0, 24], sizes = [8, 12], strides = [1, 1]} : vector<8x48xf32> to vector<8x12xf32>
    %376 = math.tanh %375 : vector<8x12xf32>
    %377 = vector.extract_strided_slice %358 {offsets = [0, 36], sizes = [8, 12], strides = [1, 1]} : vector<8x48xf32> to vector<8x12xf32>
    %cst_129 = arith.constant 5.000000e-01 : f32
    %378 = vector.broadcast %cst_129 : f32 to vector<8x12xf32>
    %379 = arith.mulf %378, %377 : vector<8x12xf32>
    %380 = math.tanh %379 : vector<8x12xf32>
    %cst_130 = arith.constant 5.000000e-01 : f32
    %381 = vector.broadcast %cst_130 : f32 to vector<8x12xf32>
    %382 = arith.mulf %381, %380 : vector<8x12xf32>
    %cst_131 = arith.constant 5.000000e-01 : f32
    %383 = vector.broadcast %cst_131 : f32 to vector<8x12xf32>
    %384 = arith.addf %382, %383 : vector<8x12xf32>
    %385 = arith.mulf %374, %347 : vector<8x12xf32>
    %386 = arith.mulf %366, %376 : vector<8x12xf32>
    %387 = arith.addf %385, %386 : vector<8x12xf32>
    %388 = math.tanh %387 : vector<8x12xf32>
    %389 = arith.mulf %384, %388 : vector<8x12xf32>
    %390 = arith.truncf %389 : vector<8x12xf32> to vector<8x12xbf16>
    %cst_132 = arith.constant dense<0.000000e+00> : vector<8x6xf32>
    %391 = tpu.matmul %390, %4, %cst_132 {dimension_numbers = #tpu.dot_dimension_numbers<[1], [0], [0], [1], [0, 0, 1, 1], [], []>} : vector<8x12xbf16>, vector<12x6xbf16>, vector<8x6xf32> -> vector<8x6xf32>
    %392 = vector.broadcast %5 : vector<1x6xf32> to vector<8x6xf32>
    %393 = arith.addf %391, %392 : vector<8x6xf32>
    %394 = tpu.concatenate %311, %389 in 1 : vector<8x32xf32>, vector<8x12xf32> -> vector<8x44xf32>
    %395 = arith.truncf %394 : vector<8x44xf32> to vector<8x44xbf16>
    %cst_133 = arith.constant dense<0.000000e+00> : vector<8x48xf32>
    %396 = tpu.matmul %395, %2, %cst_133 {dimension_numbers = #tpu.dot_dimension_numbers<[1], [0], [0], [1], [0, 0, 1, 1], [], []>} : vector<8x44xbf16>, vector<44x48xbf16>, vector<8x48xf32> -> vector<8x48xf32>
    %397 = vector.broadcast %3 : vector<1x48xf32> to vector<8x48xf32>
    %398 = arith.addf %396, %397 : vector<8x48xf32>
    %399 = vector.extract_strided_slice %398 {offsets = [0, 0], sizes = [8, 12], strides = [1, 1]} : vector<8x48xf32> to vector<8x12xf32>
    %cst_134 = arith.constant 5.000000e-01 : f32
    %400 = vector.broadcast %cst_134 : f32 to vector<8x12xf32>
    %401 = arith.mulf %400, %399 : vector<8x12xf32>
    %402 = math.tanh %401 : vector<8x12xf32>
    %cst_135 = arith.constant 5.000000e-01 : f32
    %403 = vector.broadcast %cst_135 : f32 to vector<8x12xf32>
    %404 = arith.mulf %403, %402 : vector<8x12xf32>
    %cst_136 = arith.constant 5.000000e-01 : f32
    %405 = vector.broadcast %cst_136 : f32 to vector<8x12xf32>
    %406 = arith.addf %404, %405 : vector<8x12xf32>
    %407 = vector.extract_strided_slice %398 {offsets = [0, 12], sizes = [8, 12], strides = [1, 1]} : vector<8x48xf32> to vector<8x12xf32>
    %cst_137 = arith.constant 5.000000e-01 : f32
    %408 = vector.broadcast %cst_137 : f32 to vector<8x12xf32>
    %409 = arith.mulf %408, %407 : vector<8x12xf32>
    %410 = math.tanh %409 : vector<8x12xf32>
    %cst_138 = arith.constant 5.000000e-01 : f32
    %411 = vector.broadcast %cst_138 : f32 to vector<8x12xf32>
    %412 = arith.mulf %411, %410 : vector<8x12xf32>
    %cst_139 = arith.constant 5.000000e-01 : f32
    %413 = vector.broadcast %cst_139 : f32 to vector<8x12xf32>
    %414 = arith.addf %412, %413 : vector<8x12xf32>
    %415 = vector.extract_strided_slice %398 {offsets = [0, 24], sizes = [8, 12], strides = [1, 1]} : vector<8x48xf32> to vector<8x12xf32>
    %416 = math.tanh %415 : vector<8x12xf32>
    %417 = vector.extract_strided_slice %398 {offsets = [0, 36], sizes = [8, 12], strides = [1, 1]} : vector<8x48xf32> to vector<8x12xf32>
    %cst_140 = arith.constant 5.000000e-01 : f32
    %418 = vector.broadcast %cst_140 : f32 to vector<8x12xf32>
    %419 = arith.mulf %418, %417 : vector<8x12xf32>
    %420 = math.tanh %419 : vector<8x12xf32>
    %cst_141 = arith.constant 5.000000e-01 : f32
    %421 = vector.broadcast %cst_141 : f32 to vector<8x12xf32>
    %422 = arith.mulf %421, %420 : vector<8x12xf32>
    %cst_142 = arith.constant 5.000000e-01 : f32
    %423 = vector.broadcast %cst_142 : f32 to vector<8x12xf32>
    %424 = arith.addf %422, %423 : vector<8x12xf32>
    %425 = arith.mulf %414, %387 : vector<8x12xf32>
    %426 = arith.mulf %406, %416 : vector<8x12xf32>
    %427 = arith.addf %425, %426 : vector<8x12xf32>
    %428 = math.tanh %427 : vector<8x12xf32>
    %429 = arith.mulf %424, %428 : vector<8x12xf32>
    %430 = arith.truncf %429 : vector<8x12xf32> to vector<8x12xbf16>
    %cst_143 = arith.constant dense<0.000000e+00> : vector<8x6xf32>
    %431 = tpu.matmul %430, %4, %cst_143 {dimension_numbers = #tpu.dot_dimension_numbers<[1], [0], [0], [1], [0, 0, 1, 1], [], []>} : vector<8x12xbf16>, vector<12x6xbf16>, vector<8x6xf32> -> vector<8x6xf32>
    %432 = vector.broadcast %5 : vector<1x6xf32> to vector<8x6xf32>
    %433 = arith.addf %431, %432 : vector<8x6xf32>
    %434 = tpu.concatenate %353, %393, %433 in 1 : vector<8x6xf32>, vector<8x6xf32>, vector<8x6xf32> -> vector<8x18xf32>
    %c0_144 = arith.constant 0 : index
    %c0_145 = arith.constant 0 : index
    %435 = vector.load %arg8[%c0_144, %c0_145] : memref<8x18xf32, #tpu.memory_space<vmem>>, vector<8x18xf32>
    tpu.vector_store %arg8[%c0_144, %c0_145], %434 {strides = array<i32>} : memref<8x18xf32, #tpu.memory_space<vmem>>, vector<8x18xf32>,
    return
  }
  func.func @transform_0(%arg0: i32) -> (i32, i32, i32) {
    %c0_i32 = arith.constant 0 : i32
    %c0_i32_0 = arith.constant 0 : i32
    %c0_i32_1 = arith.constant 0 : i32
    return %arg0, %c0_i32, %c0_i32_0 : i32, i32, i32
  }
  func.func @transform_1(%arg0: i32) -> (i32, i32) {
    %c0_i32 = arith.constant 0 : i32
    %c0_i32_0 = arith.constant 0 : i32
    %c0_i32_1 = arith.constant 0 : i32
    return %c0_i32, %c0_i32_0 : i32, i32
  }
  func.func @transform_2(%arg0: i32) -> (i32, i32) {
    %c0_i32 = arith.constant 0 : i32
    %c0_i32_0 = arith.constant 0 : i32
    %c0_i32_1 = arith.constant 0 : i32
    return %c0_i32, %c0_i32_0 : i32, i32
  }
  func.func @transform_3(%arg0: i32) -> (i32, i32) {
    %c0_i32 = arith.constant 0 : i32
    %c0_i32_0 = arith.constant 0 : i32
    %c0_i32_1 = arith.constant 0 : i32
    return %c0_i32, %c0_i32_0 : i32, i32
  }
  func.func @transform_4(%arg0: i32) -> (i32, i32) {
    %c0_i32 = arith.constant 0 : i32
    %c0_i32_0 = arith.constant 0 : i32
    %c0_i32_1 = arith.constant 0 : i32
    return %c0_i32, %c0_i32_0 : i32, i32
  }
  func.func @transform_5(%arg0: i32) -> (i32, i32) {
    %c0_i32 = arith.constant 0 : i32
    %c0_i32_0 = arith.constant 0 : i32
    %c0_i32_1 = arith.constant 0 : i32
    return %c0_i32, %c0_i32_0 : i32, i32
  }
  func.func @transform_6(%arg0: i32) -> (i32, i32) {
    %c0_i32 = arith.constant 0 : i32
    %c0_i32_0 = arith.constant 0 : i32
    %c0_i32_1 = arith.constant 0 : i32
    return %c0_i32, %c0_i32_0 : i32, i32
  }
  func.func @transform_7(%arg0: i32) -> (i32, i32) {
    %c0_i32 = arith.constant 0 : i32
    %c0_i32_0 = arith.constant 0 : i32
    return %arg0, %c0_i32 : i32, i32
  }
}

</mosaic_0001>

<bundles_post_ra>
// kernel: tpu_custom_call.1
= control target key start
LH: loop header
LB: loop body
LE: loop exit
PB: predicated region body
PF: predicated region fallthrough
CT: control target
= control target key end

     0   :  { %12 = vsyncpa [#allocation3], 0  ;;  %s2140_s0 = inlined_call_operand.hbm [shape: f32[8,8,15], index: 0, kind: input, shape index: {}]   ;;  %s2141_s1 = inlined_call_operand.hbm [shape: bf16[47,128], index: 1, kind: input, shape index: {}]   ;;  %s2142_s2 = inlined_call_operand.vmem [shape: f32[1,128], index: 2, kind: input, shape index: {}]   ;;  %s2143_s3 = inlined_call_operand.hbm [shape: bf16[44,48], index: 3, kind: input, shape index: {}]   ;;  %s2144_s4 = inlined_call_operand.vmem [shape: f32[1,48], index: 4, kind: input, shape index: {}]   ;;  %s2145_s5 = inlined_call_operand.vmem [shape: bf16[12,6], index: 5, kind: input, shape index: {}]   ;;  %s2146_s6 = inlined_call_operand.vmem [shape: f32[1,6], index: 6, kind: input, shape index: {}]   ;;  %s2147_s7 = inlined_call_operand.hbm [shape: f32[8,18], index: 7, kind: output, shape index: {}]  }
   0x1   :  { %13 = vsyncpa [#allocation6], 0 }
   0x2   :  { %14 = vsyncpa [#allocation4], 0  ;;  %s1752_s24 = smov [#allocation5]   ;;  %s1658_s28 = scalar_lea.hbm %s2141_s1, 384 }
   0x3   :  { %s32_s25 = sshll.u32 %s1752_s24, 4  ;;  %p1659_p0 = scmp.ne.s32.totalorder %s2141_s1, %s1658_s28  ;;  %s33_s25 = int_to_ptr.vmem [resolvable:$true] %s32_s25 }
   0x4   :  { %p1662_p1 = scmp.lt.u32.totalorder %s1658_s28, %s2141_s1 }
   0x6   :  { %p1664_p2 = pnand %p1662_p1, %p1659_p0 }
   0x8   :  { %1667 = shalt.err (!%p1664_p2)
}
   0x9   :  { %s1668_s10 = scalar_lea.vmem %s33_s25, 384  ;;  %p1673_p4 = scmp.lt.s32.totalorder %s33_s25, %s33_s25 }
   0xa   :  { %p1669_p3 = scmp.ne.s32.totalorder %s33_s25, %s1668_s10  ;;  %p1674_p5 = scmp.lt.s32.totalorder %s1668_s10, %s1668_s10 }
   0xc   :  { %p1675_p6 = por %p1674_p5, %p1673_p4 }
   0xe   :  { %p1676_p7 = pnand %p1675_p6, %p1669_p3 }
  0x10   :  { %1679 = shalt.err (!%p1676_p7)
}
  0x11   :  { %s1753_s11 = smov 64   ;;  %s1754_s12 = smov 4  }
  0x12   :  { %38 = dma.hbm_to_vmem [thread:$0]  %s2141_s1, 384, %s33_s25, [#allocation6], %s1753_s11, %s1753_s11, %s1754_s12  }
  0x13   :  { %s1755_s15 = smov [#allocation2]   ;;  %s1680_s19 = scalar_lea.hbm %s2140_s0, 1024 }
  0x14   :  { %s20_s16 = sshll.u32 %s1755_s15, 4  ;;  %p1681_p8 = scmp.ne.s32.totalorder %s2140_s0, %s1680_s19  ;;  %s21_s16 = int_to_ptr.vmem [resolvable:$true] %s20_s16 }
  0x15   :  { %p1684_p9 = scmp.lt.u32.totalorder %s1680_s19, %s2140_s0 }
  0x17   :  { %p1686_p10 = pnand %p1684_p9, %p1681_p8 }
  0x19   :  { %1689 = shalt.err (!%p1686_p10)
}
  0x1a   :  { %s1690_s24 = scalar_lea.vmem %s21_s16, 1024  ;;  %p1695_p12 = scmp.lt.s32.totalorder %s21_s16, %s21_s16 }
  0x1b   :  { %p1691_p11 = scmp.ne.s32.totalorder %s21_s16, %s1690_s24  ;;  %p1696_p13 = scmp.lt.s32.totalorder %s1690_s24, %s1690_s24 }
  0x1d   :  { %p1697_p0 = por %p1696_p13, %p1695_p12 }
  0x1f   :  { %p1698_p1 = pnand %p1697_p0, %p1691_p11 }
  0x21   :  { %1701 = shalt.err (!%p1698_p1)
}
  0x22   :  { %s1756_s1 = smov 128   ;;  %s1757_s25 = smov 8  }
  0x23   :  { %26 = dma.hbm_to_vmem [thread:$0]  %s2140_s0, 1024, %s21_s16, [#allocation3], %s1756_s1, %s1756_s1, %s1757_s25  }
  0x24   :  { %s1758_s28 = smov [#allocation7]   ;;  %s1702_s9 = scalar_lea.hbm %s2143_s3, 384 }
  0x25   :  { %s46_s29 = sshll.u32 %s1758_s28, 4  ;;  %p1703_p2 = scmp.ne.s32.totalorder %s2143_s3, %s1702_s9  ;;  %s47_s29 = int_to_ptr.vmem [resolvable:$true] %s46_s29 }
  0x26   :  { %p1706_p3 = scmp.lt.u32.totalorder %s1702_s9, %s2143_s3 }
  0x28   :  { %p1708_p4 = pnand %p1706_p3, %p1703_p2 }
  0x2a   :  { %1711 = shalt.err (!%p1708_p4)
}
  0x2b   :  { %s1712_s17 = scalar_lea.vmem %s47_s29, 384  ;;  %p1717_p6 = scmp.lt.s32.totalorder %s47_s29, %s47_s29 }
  0x2c   :  { %p1713_p5 = scmp.ne.s32.totalorder %s47_s29, %s1712_s17  ;;  %p1718_p7 = scmp.lt.s32.totalorder %s1712_s17, %s1712_s17 }
  0x2e   :  { %p1719_p8 = por %p1718_p7, %p1717_p6 }
  0x30   :  { %p1720_p9 = pnand %p1719_p8, %p1713_p5 }
  0x32   :  { %1723 = shalt.err (!%p1720_p9)
}
  0x33   :  { %52 = dma.hbm_to_vmem [thread:$0]  %s2143_s3, 384, %s47_s29, [#allocation6], %s1753_s11, %s1753_s11, %s1754_s12  }
  0x34   :  { %1746 = dma.done.wait [#allocation3], 1024  }
  0x35   :  { %1747 = vsyncadd [#allocation3], 4294966272 }
  0x36   :  { %1748 = dma.done.wait [#allocation6], 768  }
  0x37   :  { %1749 = vsyncadd [#allocation6], 4294966528  ;;  %vm154_vm0 = vcmask 1046528   ;;  %v1759_v0 = vmov 0.0   ;;  %vm1760_vm1 = vmmov 0   ;;  %vm155_vm2 = vcmask 1047552  }
  0x38   :  { %1438 = vmatprep.subr.bf16.mxu0 %v1759_v0  ;;  %1448 = vmatprep.subr.bf16.mxu1 %v1759_v0  ;;  %v1761_v1 = vmov 65535   ;;  %vm103_vm3 = vcmask 1041409   ;;  %vm106_vm4 = vcmask 1042434   ;;  %vm109_vm5 = vcmask 1043459   ;;  %v1859_v4 = vld [vmem:[#allocation5] sm:$0xff]   ;;  %v1861_v5 = vld [vmem:[#allocation5 + $0x8] sm:$0xff]  }
  0x39   :  { %1444 = vmatprep.mubr.msk.bf16.mxu0 %vm1760_vm1, %v1759_v0  ;;  %1454 = vmatprep.mubr.msk.bf16.mxu1 %vm1760_vm1, %v1759_v0  ;;  %v156_v2 = vsel %vm154_vm0, 4294967295, %v1761_v1  ;;  %vm112_vm6 = vcmask 1044484   ;;  %vm115_vm7 = vcmask 1045509   ;;  %v1587_v6 = vld [vmem:[#allocation5 + $0x10] sm:$0xff]   ;;  %vm118_vm8 = vcmask 1046534   ;;  %s1762_s18 = smov 32  }
  0x3a   :  { %v157_v3 = vsel %vm155_vm2, %v156_v2, 0  ;;  %1439 = vmatpush3.bf16.msra.mxu0 %v1859_v4  ;;  %1449 = vmatpush3.bf16.msra.mxu1 %v1859_v4  ;;  %v86_v7 = vld [vmem:[#allocation2] sm:$0x1]  ;;  %v87_v8 = vld [vmem:[#allocation2 + $0x8] sm:$0x1]  ;;  %vm121_vm9 = vcmask 1047559  }
  0x3b   :  { %1440 = vmatprep.subr.bf16.mxu0 %v1759_v0  ;;  %v88_v9 = vld [vmem:[#allocation2 + $0x10] sm:$0x1]  ;;  %1450 = vmatprep.subr.bf16.mxu1 %v1759_v0  ;;  %v89_v10 = vld [vmem:[#allocation2 + $0x18] sm:$0x1]  ;;  %v90_v11 = vld [vmem:[#allocation2 + $0x20] sm:$0x1]  ;;  %v1868_v17 = vand.u32 %v1587_v6, %v157_v3 }
  0x3c   :  { %v91_v12 = vld [vmem:[#allocation2 + $0x28] sm:$0x1]  ;;  %v92_v13 = vld [vmem:[#allocation2 + $0x30] sm:$0x1]  ;;  %v93_v14 = vld [vmem:[#allocation2 + $0x38] sm:$0x1] }
  0x3d   :  { %v102_v15 = vrot.slane %v87_v8, 7  ;;  %v105_v16 = vrot.slane %v88_v9, 6  ;;  %v108_v18 = vrot.slane %v89_v10, 5  ;;  %v111_v19 = vrot.slane %v90_v11, 4  ;;  %v1897_v32 = vld [vmem:[%s2142_s2] ss:$0 sm:$0xff] }
  0x3e   :  { %1441 = vmatpush3.bf16.msra.mxu0 %v1861_v5  ;;  %v114_v20 = vrot.slane %v91_v12, 3  ;;  %1451 = vmatpush3.bf16.msra.mxu1 %v1861_v5  ;;  %v117_v22 = vrot.slane %v92_v13, 2  ;;  %v120_v23 = vrot.slane %v93_v14, 1  ;;  %vm124_vm10 = vcmask 121856   ;;  %s1763_s2 = smov 47   ;;  %s1764_s20 = smov 104  }
  0x3f   :  { %1442 = vmatprep.subr.bf16.mxu0 %v1759_v0  ;;  %v104_v21 = vsel %vm103_vm3, %v102_v15, %v86_v7  ;;  %1452 = vmatprep.subr.bf16.mxu1 %v1759_v0  ;;  %vm150_vm11 = vcmask 384000   ;;  %v224_v51 = vld [vmem:[#allocation2 + $0x9] sm:$0x1]  ;;  %v225_v52 = vld [vmem:[#allocation2 + $0x11] sm:$0x1]  ;;  %vm971_vm12 = vcmask 1045504  }
  0x40   :  { %v107_v24 = vsel %vm106_vm4, %v105_v16, %v104_v21  ;;  %v239_v53 = vrot.slane %v224_v51, 7  ;;  %v223_v54 = vld [vmem:[#allocation2 + $0x1] sm:$0x1]  ;;  %v226_v55 = vld [vmem:[#allocation2 + $0x19] sm:$0x1]  ;;  %v241_v56 = vrot.slane %v225_v52, 6 }
  0x41   :  { %v110_v25 = vsel %vm109_vm5, %v108_v18, %v107_v24  ;;  %v227_v58 = vld [vmem:[#allocation2 + $0x21] sm:$0x1]  ;;  %v243_v59 = vrot.slane %v226_v55, 5  ;;  %v228_v61 = vld [vmem:[#allocation2 + $0x29] sm:$0x1]  ;;  %vm941_vm13 = vcmask 261120  }
  0x42   :  { %1443 = vmatpush3.bf16.msra.mxu0 %v1868_v17  ;;  %v113_v26 = vsel %vm112_vm6, %v111_v19, %v110_v25  ;;  %1453 = vmatpush3.bf16.msra.mxu1 %v1868_v17  ;;  %v240_v57 = vsel %vm103_vm3, %v239_v53, %v223_v54  ;;  %v245_v62 = vrot.slane %v227_v58, 4  ;;  %v229_v1 = vld [vmem:[#allocation2 + $0x31] sm:$0x1]  ;;  %v247_v2 = vrot.slane %v228_v61, 3  ;;  %v230_v6 = vld [vmem:[#allocation2 + $0x39] sm:$0x1] }
  0x43   :  { %v116_v27 = vsel %vm115_vm7, %v114_v20, %v113_v26  ;;  %1458 = vmatprep.subr.bf16.mxu0 %v1759_v0  ;;  %1468 = vmatprep.subr.bf16.mxu1 %v1759_v0  ;;  %v242_v60 = vsel %vm106_vm4, %v241_v56, %v240_v57  ;;  %v249_v7 = vrot.slane %v229_v1, 2  ;;  %v251_v9 = vrot.slane %v230_v6, 1  ;;  %v332_v51 = vld [vmem:[#allocation2 + $0x3a] sm:$0x1]  ;;  %s1766_s23 = smov 24   ;;  %s1767_s24 = smov 124  }
  0x44   :  { %v119_v28 = vsel %vm118_vm8, %v117_v22, %v116_v27  ;;  %v244_v63 = vsel %vm109_vm5, %v243_v59, %v242_v60  ;;  %v353_v54 = vrot.slane %v332_v51, 1  ;;  %vm967_vm14 = vcmask 359424   ;;  %s1768_s1 = smov 92   ;;  %s1769_s26 = smov 6  }
  0x45   :  { %v122_v29 = vsel %vm121_vm9, %v120_v23, %v119_v28  ;;  %v246_v3 = vsel %vm112_vm6, %v245_v62, %v244_v63  ;;  %vm1052_vm15 = vcmask 97280   ;;  %vm1343_vm0 = vcmask 48128  }
  0x46   :  { %v125_v30 = vsel %vm124_vm10, %v122_v29, 0.0  ;;  %v248_v8 = vsel %vm115_vm7, %v247_v2, %v246_v3 }
  0x47   :  { %v126_v31 = vpack.c.bf16 %v125_v30, %v125_v30  ;;  %v250_v10 = vsel %vm118_vm8, %v249_v7, %v248_v8 }
  0x48   :  { %v252_v11 = vsel %vm121_vm9, %v251_v9, %v250_v10 }
  0x49   :  { %1445 = vmatmul.mubr.msk.bf16.vlgmr.msra.gmra.mrb[0].mxu0 %vm150_vm11, %v126_v31 }
  0x4a   :  { %1459 = vmatpush3.bf16.msra.mxu0 %v1859_v4  ;;  %1464 = vmatprep.mubr.msk.bf16.mxu0 %vm1760_vm1, %v1759_v0 }
  0x4b   :  { %1460 = vmatprep.subr.bf16.mxu0 %v1759_v0 }
  0x4e   :  { %1461 = vmatpush3.bf16.msra.mxu0 %v1861_v5 }
  0x4f   :  { %1462 = vmatprep.subr.bf16.mxu0 %v1759_v0 }
  0x52   :  { %1463 = vmatpush3.bf16.msra.mxu0 %v1868_v17 }
  0x53   :  { %1478 = vmatprep.subr.bf16.mxu0 %v1759_v0 }
 0x11c   :  { %v195_v33 = vpop.f32.mrb[0].mxu0 }
 0x11d   :  { %v196_v34 = vadd.f32 %v1897_v32, %v195_v33  ;;  %v1446_v35 = vpop.f32.mrb[1].mxu0 }
 0x11e   :  { %v198_v36 = vpop.f32.mrb[2].mxu0  ;;  %v326_v35 = vld [vmem:[#allocation2 + $0xa] sm:$0x1] }
 0x11f   :  { %v1447_v37 = vpop.f32.mrb[3].mxu0  ;;  %1592 = vtanh.f32 %v196_v34  ;;  %v201_v39 = vmul.f32 0.5, %v196_v34  ;;  %v327_v36 = vld [vmem:[#allocation2 + $0x12] sm:$0x1] }
 0x120   :  { %v341_v37 = vrot.slane %v326_v35, 7  ;;  %v434_v35 = vld [vmem:[#allocation2 + $0x3b] sm:$0x1] }
 0x121   :  { %1594 = vtanh.f32 %v201_v39  ;;  %v328_v39 = vld [vmem:[#allocation2 + $0x1a] sm:$0x1] }
 0x129   :  { %v1593_v38 = vpop.eup %1592 }
 0x12a   :  { %208 = vrot.lane.b32.xlu0 %v1593_v38, %s1753_s11  ;;  %v325_v38 = vld [vmem:[#allocation2 + $0x2] sm:$0x1] }
 0x12b   :  { %v1595_v40 = vpop.eup %1594 }
 0x12c   :  { %v203_v41 = vmul.f32 0.5, %v1595_v40  ;;  %v343_v40 = vrot.slane %v327_v36, 6 }
 0x12e   :  { %v204_v42 = vadd.f32 0.5, %v203_v41  ;;  %v342_v41 = vsel %vm103_vm3, %v341_v37, %v325_v38  ;;  %v455_v38 = vrot.slane %v434_v35, 1 }
 0x130   :  { %v206_v45 = vmul.f32 0.0, %v204_v42 }
 0x19c   :  { %v209_v43 = vpop.permute.xlu0 %208 }
 0x19d   :  { %v211_v44 = vmul.f32 %v209_v43, %v204_v42  ;;  %v345_v43 = vrot.slane %v328_v39, 5 }
 0x19f   :  { %213 = vrot.lane.b32.xlu0 %v211_v44, %s1762_s18  ;;  %v344_v44 = vsel %vm106_vm4, %v343_v40, %v342_v41 }
 0x211   :  { %v214_v46 = vpop.permute.xlu0 %213 }
 0x212   :  { %v216_v47 = vadd.f32 %v214_v46, %v206_v45  ;;  %v330_v45 = vld [vmem:[#allocation2 + $0x2a] sm:$0x1] }
 0x214   :  { %1596 = vtanh.f32 %v216_v47 }
 0x21e   :  { %v1597_v48 = vpop.eup %1596 }
 0x21f   :  { %219 = vrot.lane.b32.xlu1 %v1597_v48, %s1753_s11  ;;  %v331_v48 = vld [vmem:[#allocation2 + $0x32] sm:$0x1] }
 0x220   :  { %v351_v52 = vrot.slane %v331_v48, 2 }
 0x291   :  { %v220_v49 = vpop.permute.xlu1 %219 }
 0x292   :  { %v222_v50 = vmul.f32 %v220_v49, %v204_v42  ;;  %v329_v42 = vld [vmem:[#allocation2 + $0x22] sm:$0x1]  ;;  %v349_v49 = vrot.slane %v330_v45, 3 }
 0x293   :  { %v347_v46 = vrot.slane %v329_v42, 4 }
 0x294   :  { %255 = vrot.lane.b32.xlu1 %v222_v50, %s1763_s2 }
 0x306   :  { %v256_v12 = vpop.permute.xlu1 %255 }
 0x307   :  { %v258_v13 = vsel %vm124_vm10, %v252_v11, %v256_v12 }
 0x308   :  { %v259_v14 = vpack.c.bf16 %v258_v13, %v258_v13 }
 0x30a   :  { %1455 = vmatmul.mubr.msk.bf16.vlgmr.msra.gmra.mrb[0].mxu1 %vm150_vm11, %v259_v14 }
 0x30b   :  { %1469 = vmatpush3.bf16.msra.mxu1 %v1859_v4  ;;  %1474 = vmatprep.mubr.msk.bf16.mxu1 %vm1760_vm1, %v1759_v0 }
 0x30c   :  { %1470 = vmatprep.subr.bf16.mxu1 %v1759_v0 }
 0x30f   :  { %1471 = vmatpush3.bf16.msra.mxu1 %v1861_v5 }
 0x310   :  { %1472 = vmatprep.subr.bf16.mxu1 %v1759_v0 }
 0x313   :  { %1473 = vmatpush3.bf16.msra.mxu1 %v1868_v17 }
 0x314   :  { %1488 = vmatprep.subr.bf16.mxu1 %v1759_v0 }
 0x3dd   :  { %v297_v15 = vpop.f32.mrb[0].mxu1 }
 0x3de   :  { %v298_v16 = vadd.f32 %v1897_v32, %v297_v15  ;;  %v1456_v18 = vpop.f32.mrb[1].mxu1 }
 0x3df   :  { %v300_v19 = vpop.f32.mrb[2].mxu1  ;;  %v428_v18 = vld [vmem:[#allocation2 + $0xb] sm:$0x1] }
 0x3e0   :  { %1598 = vtanh.f32 %v298_v16  ;;  %v1457_v20 = vpop.f32.mrb[3].mxu1  ;;  %v303_v22 = vmul.f32 0.5, %v298_v16  ;;  %v429_v19 = vld [vmem:[#allocation2 + $0x13] sm:$0x1] }
 0x3e1   :  { %v443_v20 = vrot.slane %v428_v18, 7  ;;  %v536_v18 = vld [vmem:[#allocation2 + $0x3c] sm:$0x1] }
 0x3e2   :  { %1600 = vtanh.f32 %v303_v22  ;;  %v430_v22 = vld [vmem:[#allocation2 + $0x1b] sm:$0x1] }
 0x3ea   :  { %v1599_v21 = vpop.eup %1598 }
 0x3eb   :  { %310 = vrot.lane.b32.xlu0 %v1599_v21, %s1753_s11  ;;  %v427_v21 = vld [vmem:[#allocation2 + $0x3] sm:$0x1] }
 0x3ec   :  { %v1601_v23 = vpop.eup %1600 }
 0x3ed   :  { %v305_v24 = vmul.f32 0.5, %v1601_v23  ;;  %v445_v23 = vrot.slane %v429_v19, 6 }
 0x3ef   :  { %v306_v25 = vadd.f32 0.5, %v305_v24  ;;  %v444_v24 = vsel %vm103_vm3, %v443_v20, %v427_v21  ;;  %v557_v21 = vrot.slane %v536_v18, 1 }
 0x3f1   :  { %v308_v28 = vmul.f32 %v306_v25, %v216_v47  ;;  %v346_v47 = vsel %vm109_vm5, %v345_v43, %v344_v44 }
 0x3f2   :  { %v348_v50 = vsel %vm112_vm6, %v347_v46, %v346_v47 }
 0x3f3   :  { %v350_v53 = vsel %vm115_vm7, %v349_v49, %v348_v50 }
 0x3f4   :  { %v352_v55 = vsel %vm118_vm8, %v351_v52, %v350_v53 }
 0x3f5   :  { %v354_v56 = vsel %vm121_vm9, %v353_v54, %v352_v55 }
 0x45d   :  { %v311_v26 = vpop.permute.xlu0 %310 }
 0x45e   :  { %v313_v27 = vmul.f32 %v311_v26, %v306_v25  ;;  %v447_v26 = vrot.slane %v430_v22, 5 }
 0x460   :  { %315 = vrot.lane.b32.xlu1 %v313_v27, %s1762_s18  ;;  %v446_v27 = vsel %vm106_vm4, %v445_v23, %v444_v24 }
 0x4d2   :  { %v316_v29 = vpop.permute.xlu1 %315 }
 0x4d3   :  { %v318_v30 = vadd.f32 %v316_v29, %v308_v28  ;;  %v432_v28 = vld [vmem:[#allocation2 + $0x2b] sm:$0x1] }
 0x4d5   :  { %1602 = vtanh.f32 %v318_v30 }
 0x4df   :  { %v1603_v31 = vpop.eup %1602 }
 0x4e0   :  { %321 = vrot.lane.b32.xlu0 %v1603_v31, %s1753_s11  ;;  %v433_v31 = vld [vmem:[#allocation2 + $0x33] sm:$0x1] }
 0x4e1   :  { %v453_v36 = vrot.slane %v433_v31, 2 }
 0x552   :  { %v322_v33 = vpop.permute.xlu0 %321 }
 0x553   :  { %v324_v34 = vmul.f32 %v322_v33, %v306_v25  ;;  %v431_v25 = vld [vmem:[#allocation2 + $0x23] sm:$0x1]  ;;  %v451_v33 = vrot.slane %v432_v28, 3 }
 0x554   :  { %v449_v29 = vrot.slane %v431_v25, 4 }
 0x555   :  { %357 = vrot.lane.b32.xlu1 %v324_v34, %s1763_s2 }
 0x5c7   :  { %v358_v57 = vpop.permute.xlu1 %357 }
 0x5c8   :  { %v360_v58 = vsel %vm124_vm10, %v354_v56, %v358_v57 }
 0x5c9   :  { %v361_v59 = vpack.c.bf16 %v360_v58, %v360_v58 }
 0x5cb   :  { %1465 = vmatmul.mubr.msk.bf16.vlgmr.msra.gmra.mrb[4].mxu0 %vm150_vm11, %v361_v59 }
 0x5cc   :  { %1479 = vmatpush3.bf16.msra.mxu0 %v1859_v4  ;;  %1484 = vmatprep.mubr.msk.bf16.mxu0 %vm1760_vm1, %v1759_v0 }
 0x5cd   :  { %1480 = vmatprep.subr.bf16.mxu0 %v1759_v0 }
 0x5d0   :  { %1481 = vmatpush3.bf16.msra.mxu0 %v1861_v5 }
 0x5d1   :  { %1482 = vmatprep.subr.bf16.mxu0 %v1759_v0 }
 0x5d4   :  { %1483 = vmatpush3.bf16.msra.mxu0 %v1868_v17 }
 0x5d5   :  { %1498 = vmatprep.subr.bf16.mxu0 %v1759_v0 }
 0x69e   :  { %v399_v60 = vpop.f32.mrb[4].mxu0 }
 0x69f   :  { %v400_v61 = vadd.f32 %v1897_v32, %v399_v60  ;;  %v1466_v62 = vpop.f32.mrb[5].mxu0 }
 0x6a0   :  { %v402_v63 = vpop.f32.mrb[6].mxu0  ;;  %v530_v62 = vld [vmem:[#allocation2 + $0xc] sm:$0x1] }
 0x6a1   :  { %1604 = vtanh.f32 %v400_v61  ;;  %v1467_v1 = vpop.f32.mrb[7].mxu0  ;;  %v405_v3 = vmul.f32 0.5, %v400_v61  ;;  %v531_v63 = vld [vmem:[#allocation2 + $0x14] sm:$0x1] }
 0x6a2   :  { %v545_v1 = vrot.slane %v530_v62, 7  ;;  %v638_v62 = vld [vmem:[#allocation2 + $0x3d] sm:$0x1] }
 0x6a3   :  { %1606 = vtanh.f32 %v405_v3  ;;  %v532_v3 = vld [vmem:[#allocation2 + $0x1c] sm:$0x1] }
 0x6ab   :  { %v1605_v2 = vpop.eup %1604 }
 0x6ac   :  { %412 = vrot.lane.b32.xlu0 %v1605_v2, %s1753_s11  ;;  %v529_v2 = vld [vmem:[#allocation2 + $0x4] sm:$0x1] }
 0x6ad   :  { %v1607_v6 = vpop.eup %1606 }
 0x6ae   :  { %v407_v7 = vmul.f32 0.5, %v1607_v6  ;;  %v547_v6 = vrot.slane %v531_v63, 6 }
 0x6b0   :  { %v408_v8 = vadd.f32 0.5, %v407_v7  ;;  %v546_v7 = vsel %vm103_vm3, %v545_v1, %v529_v2  ;;  %v659_v2 = vrot.slane %v638_v62, 1 }
 0x6b2   :  { %v410_v11 = vmul.f32 %v408_v8, %v318_v30  ;;  %v448_v30 = vsel %vm109_vm5, %v447_v26, %v446_v27 }
 0x6b3   :  { %v450_v34 = vsel %vm112_vm6, %v449_v29, %v448_v30 }
 0x6b4   :  { %v452_v37 = vsel %vm115_vm7, %v451_v33, %v450_v34 }
 0x6b5   :  { %v454_v39 = vsel %vm118_vm8, %v453_v36, %v452_v37 }
 0x6b6   :  { %v456_v40 = vsel %vm121_vm9, %v455_v38, %v454_v39 }
 0x71e   :  { %v413_v9 = vpop.permute.xlu0 %412 }
 0x71f   :  { %v415_v10 = vmul.f32 %v413_v9, %v408_v8  ;;  %v549_v9 = vrot.slane %v532_v3, 5 }
 0x721   :  { %417 = vrot.lane.b32.xlu1 %v415_v10, %s1762_s18  ;;  %v548_v10 = vsel %vm106_vm4, %v547_v6, %v546_v7 }
 0x793   :  { %v418_v12 = vpop.permute.xlu1 %417 }
 0x794   :  { %v420_v13 = vadd.f32 %v418_v12, %v410_v11  ;;  %v534_v11 = vld [vmem:[#allocation2 + $0x2c] sm:$0x1] }
 0x796   :  { %1608 = vtanh.f32 %v420_v13 }
 0x7a0   :  { %v1609_v14 = vpop.eup %1608 }
 0x7a1   :  { %423 = vrot.lane.b32.xlu0 %v1609_v14, %s1753_s11  ;;  %v535_v14 = vld [vmem:[#allocation2 + $0x34] sm:$0x1] }
 0x7a2   :  { %v555_v19 = vrot.slane %v535_v14, 2 }
 0x813   :  { %v424_v15 = vpop.permute.xlu0 %423 }
 0x814   :  { %v426_v16 = vmul.f32 %v424_v15, %v408_v8  ;;  %v533_v8 = vld [vmem:[#allocation2 + $0x24] sm:$0x1]  ;;  %v553_v15 = vrot.slane %v534_v11, 3 }
 0x815   :  { %v551_v12 = vrot.slane %v533_v8, 4 }
 0x816   :  { %459 = vrot.lane.b32.xlu1 %v426_v16, %s1763_s2 }
 0x888   :  { %v460_v41 = vpop.permute.xlu1 %459 }
 0x889   :  { %v462_v42 = vsel %vm124_vm10, %v456_v40, %v460_v41 }
 0x88a   :  { %v463_v43 = vpack.c.bf16 %v462_v42, %v462_v42 }
 0x88c   :  { %1475 = vmatmul.mubr.msk.bf16.vlgmr.msra.gmra.mrb[4].mxu1 %vm150_vm11, %v463_v43 }
 0x88d   :  { %1489 = vmatpush3.bf16.msra.mxu1 %v1859_v4  ;;  %1494 = vmatprep.mubr.msk.bf16.mxu1 %vm1760_vm1, %v1759_v0 }
 0x88e   :  { %1490 = vmatprep.subr.bf16.mxu1 %v1759_v0 }
 0x891   :  { %1491 = vmatpush3.bf16.msra.mxu1 %v1861_v5 }
 0x892   :  { %1492 = vmatprep.subr.bf16.mxu1 %v1759_v0 }
 0x895   :  { %1493 = vmatpush3.bf16.msra.mxu1 %v1868_v17 }
 0x896   :  { %1508 = vmatprep.subr.bf16.mxu1 %v1759_v0 }
 0x95f   :  { %v501_v44 = vpop.f32.mrb[4].mxu1 }
 0x960   :  { %v502_v45 = vadd.f32 %v1897_v32, %v501_v44  ;;  %v1476_v46 = vpop.f32.mrb[5].mxu1 }
 0x961   :  { %v504_v47 = vpop.f32.mrb[6].mxu1  ;;  %v632_v46 = vld [vmem:[#allocation2 + $0xd] sm:$0x1] }
 0x962   :  { %1610 = vtanh.f32 %v502_v45  ;;  %v1477_v48 = vpop.f32.mrb[7].mxu1  ;;  %v507_v50 = vmul.f32 0.5, %v502_v45  ;;  %v633_v47 = vld [vmem:[#allocation2 + $0x15] sm:$0x1] }
 0x963   :  { %v647_v48 = vrot.slane %v632_v46, 7 }
 0x964   :  { %1612 = vtanh.f32 %v507_v50  ;;  %v634_v50 = vld [vmem:[#allocation2 + $0x1d] sm:$0x1] }
 0x96c   :  { %v1611_v49 = vpop.eup %1610 }
 0x96d   :  { %514 = vrot.lane.b32.xlu0 %v1611_v49, %s1753_s11  ;;  %v631_v49 = vld [vmem:[#allocation2 + $0x5] sm:$0x1] }
 0x96e   :  { %v1613_v51 = vpop.eup %1612 }
 0x96f   :  { %v509_v52 = vmul.f32 0.5, %v1613_v51  ;;  %v649_v51 = vrot.slane %v633_v47, 6 }
 0x971   :  { %v510_v53 = vadd.f32 0.5, %v509_v52  ;;  %v648_v52 = vsel %vm103_vm3, %v647_v48, %v631_v49 }
 0x973   :  { %v512_v56 = vmul.f32 %v510_v53, %v420_v13  ;;  %v550_v13 = vsel %vm109_vm5, %v549_v9, %v548_v10 }
 0x974   :  { %v552_v16 = vsel %vm112_vm6, %v551_v12, %v550_v13 }
 0x975   :  { %v554_v20 = vsel %vm115_vm7, %v553_v15, %v552_v16 }
 0x976   :  { %v556_v22 = vsel %vm118_vm8, %v555_v19, %v554_v20 }
 0x977   :  { %v558_v23 = vsel %vm121_vm9, %v557_v21, %v556_v22 }
 0x9df   :  { %v515_v54 = vpop.permute.xlu0 %514 }
 0x9e0   :  { %v517_v55 = vmul.f32 %v515_v54, %v510_v53  ;;  %v651_v54 = vrot.slane %v634_v50, 5 }
 0x9e2   :  { %519 = vrot.lane.b32.xlu1 %v517_v55, %s1762_s18  ;;  %v650_v55 = vsel %vm106_vm4, %v649_v51, %v648_v52 }
 0xa54   :  { %v520_v57 = vpop.permute.xlu1 %519 }
 0xa55   :  { %v522_v58 = vadd.f32 %v520_v57, %v512_v56  ;;  %v636_v56 = vld [vmem:[#allocation2 + $0x2d] sm:$0x1] }
 0xa57   :  { %1614 = vtanh.f32 %v522_v58 }
 0xa61   :  { %v1615_v59 = vpop.eup %1614 }
 0xa62   :  { %525 = vrot.lane.b32.xlu0 %v1615_v59, %s1753_s11  ;;  %v637_v59 = vld [vmem:[#allocation2 + $0x35] sm:$0x1] }
 0xa63   :  { %v657_v63 = vrot.slane %v637_v59, 2 }
 0xad4   :  { %v526_v60 = vpop.permute.xlu0 %525 }
 0xad5   :  { %v528_v61 = vmul.f32 %v526_v60, %v510_v53  ;;  %v635_v53 = vld [vmem:[#allocation2 + $0x25] sm:$0x1]  ;;  %v655_v60 = vrot.slane %v636_v56, 3 }
 0xad6   :  { %v653_v57 = vrot.slane %v635_v53, 4 }
 0xad7   :  { %561 = vrot.lane.b32.xlu1 %v528_v61, %s1763_s2 }
 0xb49   :  { %v562_v24 = vpop.permute.xlu1 %561 }
 0xb4a   :  { %v564_v25 = vsel %vm124_vm10, %v558_v23, %v562_v24 }
 0xb4b   :  { %v565_v26 = vpack.c.bf16 %v564_v25, %v564_v25 }
 0xb4d   :  { %1485 = vmatmul.mubr.msk.bf16.vlgmr.msra.gmra.mrb[8].mxu0 %vm150_vm11, %v565_v26  ;;  %v734_v26 = vld [vmem:[#allocation2 + $0xe] sm:$0x1] }
 0xb4e   :  { %1499 = vmatpush3.bf16.msra.mxu0 %v1859_v4  ;;  %1504 = vmatprep.mubr.msk.bf16.mxu0 %vm1760_vm1, %v1759_v0 }
 0xb4f   :  { %1500 = vmatprep.subr.bf16.mxu0 %v1759_v0 }
 0xb52   :  { %1501 = vmatpush3.bf16.msra.mxu0 %v1861_v5 }
 0xb53   :  { %1502 = vmatprep.subr.bf16.mxu0 %v1759_v0 }
 0xb56   :  { %1503 = vmatpush3.bf16.msra.mxu0 %v1868_v17 }
 0xb57   :  { %1518 = vmatprep.subr.bf16.mxu0 %v1759_v0 }
 0xc20   :  { %v603_v27 = vpop.f32.mrb[8].mxu0 }
 0xc21   :  { %v604_v28 = vadd.f32 %v1897_v32, %v603_v27  ;;  %v1486_v29 = vpop.f32.mrb[9].mxu0  ;;  %v735_v27 = vld [vmem:[#allocation2 + $0x16] sm:$0x1] }
 0xc22   :  { %v606_v30 = vpop.f32.mrb[10].mxu0  ;;  %v733_v29 = vld [vmem:[#allocation2 + $0x6] sm:$0x1] }
 0xc23   :  { %1616 = vtanh.f32 %v604_v28  ;;  %v1487_v31 = vpop.f32.mrb[11].mxu0  ;;  %v609_v34 = vmul.f32 0.5, %v604_v28  ;;  %v749_v28 = vrot.slane %v734_v26, 7  ;;  %v736_v30 = vld [vmem:[#allocation2 + $0x1e] sm:$0x1] }
 0xc24   :  { %v751_v31 = vrot.slane %v735_v27, 6 }
 0xc25   :  { %1618 = vtanh.f32 %v609_v34  ;;  %v737_v34 = vld [vmem:[#allocation2 + $0x26] sm:$0x1] }
 0xc2d   :  { %v1617_v33 = vpop.eup %1616 }
 0xc2e   :  { %616 = vrot.lane.b32.xlu0 %v1617_v33, %s1753_s11  ;;  %v750_v33 = vsel %vm103_vm3, %v749_v28, %v733_v29 }
 0xc2f   :  { %v1619_v35 = vpop.eup %1618 }
 0xc30   :  { %v611_v36 = vmul.f32 0.5, %v1619_v35  ;;  %v753_v35 = vrot.slane %v736_v30, 5 }
 0xc32   :  { %v612_v37 = vadd.f32 0.5, %v611_v36  ;;  %v752_v36 = vsel %vm106_vm4, %v751_v31, %v750_v33 }
 0xc34   :  { %v614_v40 = vmul.f32 %v612_v37, %v522_v58  ;;  %v652_v58 = vsel %vm109_vm5, %v651_v54, %v650_v55 }
 0xc35   :  { %v654_v61 = vsel %vm112_vm6, %v653_v57, %v652_v58 }
 0xc36   :  { %v656_v1 = vsel %vm115_vm7, %v655_v60, %v654_v61 }
 0xc37   :  { %v658_v3 = vsel %vm118_vm8, %v657_v63, %v656_v1 }
 0xc38   :  { %v660_v6 = vsel %vm121_vm9, %v659_v2, %v658_v3 }
 0xca0   :  { %v617_v38 = vpop.permute.xlu0 %616 }
 0xca1   :  { %v619_v39 = vmul.f32 %v617_v38, %v612_v37  ;;  %v755_v38 = vrot.slane %v737_v34, 4 }
 0xca3   :  { %621 = vrot.lane.b32.xlu1 %v619_v39, %s1762_s18  ;;  %v754_v39 = vsel %vm109_vm5, %v753_v35, %v752_v36 }
 0xd15   :  { %v622_v41 = vpop.permute.xlu1 %621 }
 0xd16   :  { %v624_v42 = vadd.f32 %v622_v41, %v614_v40  ;;  %v739_v40 = vld [vmem:[#allocation2 + $0x36] sm:$0x1] }
 0xd18   :  { %1620 = vtanh.f32 %v624_v42 }
 0xd22   :  { %v1621_v43 = vpop.eup %1620 }
 0xd23   :  { %627 = vrot.lane.b32.xlu0 %v1621_v43, %s1753_s11  ;;  %v740_v43 = vld [vmem:[#allocation2 + $0x3e] sm:$0x1] }
 0xd24   :  { %v761_v46 = vrot.slane %v740_v43, 1 }
 0xd95   :  { %v628_v44 = vpop.permute.xlu0 %627 }
 0xd96   :  { %v630_v45 = vmul.f32 %v628_v44, %v612_v37  ;;  %v738_v37 = vld [vmem:[#allocation2 + $0x2e] sm:$0x1]  ;;  %v759_v44 = vrot.slane %v739_v40, 2 }
 0xd97   :  { %v757_v41 = vrot.slane %v738_v37, 3 }
 0xd98   :  { %663 = vrot.lane.b32.xlu1 %v630_v45, %s1763_s2 }
 0xe0a   :  { %v664_v7 = vpop.permute.xlu1 %663 }
 0xe0b   :  { %v666_v8 = vsel %vm124_vm10, %v660_v6, %v664_v7 }
 0xe0c   :  { %v667_v9 = vpack.c.bf16 %v666_v8, %v666_v8 }
 0xe0e   :  { %1495 = vmatmul.mubr.msk.bf16.vlgmr.msra.gmra.mrb[8].mxu1 %vm150_vm11, %v667_v9  ;;  %v836_v9 = vld [vmem:[#allocation2 + $0xf] sm:$0x1] }
 0xe0f   :  { %1509 = vmatpush3.bf16.msra.mxu1 %v1859_v4  ;;  %1514 = vmatprep.mubr.msk.bf16.mxu1 %vm1760_vm1, %v1759_v0 }
 0xe10   :  { %1510 = vmatprep.subr.bf16.mxu1 %v1759_v0 }
 0xe13   :  { %1511 = vmatpush3.bf16.msra.mxu1 %v1861_v5 }
 0xe14   :  { %1512 = vmatprep.subr.bf16.mxu1 %v1759_v0 }
 0xe17   :  { %1513 = vmatpush3.bf16.msra.mxu1 %v1868_v17 }
 0xe18   :  { %1528 = vmatprep.subr.bf16.mxu1 %v1759_v0 }
 0xee1   :  { %v705_v10 = vpop.f32.mrb[8].mxu1 }
 0xee2   :  { %v706_v11 = vadd.f32 %v1897_v32, %v705_v10  ;;  %v1496_v12 = vpop.f32.mrb[9].mxu1  ;;  %v837_v10 = vld [vmem:[#allocation2 + $0x17] sm:$0x1] }
 0xee3   :  { %v708_v13 = vpop.f32.mrb[10].mxu1  ;;  %v835_v12 = vld [vmem:[#allocation2 + $0x7] sm:$0x1] }
 0xee4   :  { %1622 = vtanh.f32 %v706_v11  ;;  %v1497_v4 = vpop.f32.mrb[11].mxu1  ;;  %v711_v15 = vmul.f32 0.5, %v706_v11  ;;  %v851_v11 = vrot.slane %v836_v9, 7  ;;  %v838_v13 = vld [vmem:[#allocation2 + $0x1f] sm:$0x1] }
 0xee5   :  { %v853_v4 = vrot.slane %v837_v10, 6 }
 0xee6   :  { %1624 = vtanh.f32 %v711_v15  ;;  %v839_v15 = vld [vmem:[#allocation2 + $0x27] sm:$0x1] }
 0xeee   :  { %v1623_v14 = vpop.eup %1622 }
 0xeef   :  { %718 = vrot.lane.b32.xlu0 %v1623_v14, %s1753_s11  ;;  %v852_v14 = vsel %vm103_vm3, %v851_v11, %v835_v12  ;;  %v1591_v12 = vld [vmem:[%s2145_s5] sm:$0x3f]  }
 0xef0   :  { %v1625_v16 = vpop.eup %1624 }
 0xef1   :  { %v713_v5 = vmul.f32 0.5, %v1625_v16  ;;  %v855_v16 = vrot.slane %v838_v13, 5  ;;  %v1057_v13 = vsel %vm971_vm12, %v1591_v12, 0 }
 0xef3   :  { %v714_v18 = vadd.f32 0.5, %v713_v5  ;;  %v854_v5 = vsel %vm106_vm4, %v853_v4, %v852_v14 }
 0xef5   :  { %v716_v17 = vmul.f32 %v714_v18, %v624_v42  ;;  %v756_v42 = vsel %vm112_vm6, %v755_v38, %v754_v39 }
 0xef6   :  { %v758_v45 = vsel %vm115_vm7, %v757_v41, %v756_v42 }
 0xef7   :  { %v760_v47 = vsel %vm118_vm8, %v759_v44, %v758_v45 }
 0xef8   :  { %v762_v48 = vsel %vm121_vm9, %v761_v46, %v760_v47 }
 0xf61   :  { %v719_v19 = vpop.permute.xlu0 %718 }
 0xf62   :  { %v721_v20 = vmul.f32 %v719_v19, %v714_v18  ;;  %v857_v19 = vrot.slane %v839_v15, 4 }
 0xf64   :  { %723 = vrot.lane.b32.xlu1 %v721_v20, %s1762_s18  ;;  %v856_v20 = vsel %vm109_vm5, %v855_v16, %v854_v5 }
 0xfd6   :  { %v724_v21 = vpop.permute.xlu1 %723 }
 0xfd7   :  { %v726_v22 = vadd.f32 %v724_v21, %v716_v17  ;;  %v841_v17 = vld [vmem:[#allocation2 + $0x37] sm:$0x1] }
 0xfd9   :  { %1626 = vtanh.f32 %v726_v22 }
 0xfe3   :  { %v1627_v23 = vpop.eup %1626 }
 0xfe4   :  { %729 = vrot.lane.b32.xlu0 %v1627_v23, %s1753_s11  ;;  %v842_v23 = vld [vmem:[#allocation2 + $0x3f] sm:$0x1] }
 0xfe5   :  { %v863_v26 = vrot.slane %v842_v23, 1 }
0x1056   :  { %v730_v24 = vpop.permute.xlu0 %729 }
0x1057   :  { %v732_v25 = vmul.f32 %v730_v24, %v714_v18  ;;  %v840_v18 = vld [vmem:[#allocation2 + $0x2f] sm:$0x1]  ;;  %v861_v24 = vrot.slane %v841_v17, 2 }
0x1058   :  { %v859_v21 = vrot.slane %v840_v18, 3 }
0x1059   :  { %765 = vrot.lane.b32.xlu1 %v732_v25, %s1763_s2 }
0x10cb   :  { %v766_v49 = vpop.permute.xlu1 %765 }
0x10cc   :  { %v768_v50 = vsel %vm124_vm10, %v762_v48, %v766_v49  ;;  %v2047_v48 = vld [vmem:[#allocation7 + $0x8] sm:$0xff]  }
0x10cd   :  { %v769_v51 = vpack.c.bf16 %v768_v50, %v768_v50  ;;  %v1590_v50 = vld [vmem:[#allocation7 + $0x10] sm:$0x3f]  }
0x10cf   :  { %1505 = vmatmul.mubr.msk.bf16.vlgmr.msra.gmra.mrb[12].mxu0 %vm150_vm11, %v769_v51  ;;  %v2054_v51 = vsel %vm971_vm12, %v1590_v50, 0 }
0x10d0   :  { %1524 = vmatprep.mubr.msk.bf16.mxu0 %vm1760_vm1, %v1759_v0 }
0x11a2   :  { %v807_v52 = vpop.f32.mrb[12].mxu0 }
0x11a3   :  { %v808_v53 = vadd.f32 %v1897_v32, %v807_v52  ;;  %v1506_v54 = vpop.f32.mrb[13].mxu0 }
0x11a4   :  { %v810_v55 = vpop.f32.mrb[14].mxu0 }
0x11a5   :  { %1628 = vtanh.f32 %v808_v53  ;;  %v1507_v56 = vpop.f32.mrb[15].mxu0  ;;  %v813_v58 = vmul.f32 0.5, %v808_v53 }
0x11a7   :  { %1630 = vtanh.f32 %v813_v58 }
0x11af   :  { %v1629_v57 = vpop.eup %1628 }
0x11b0   :  { %820 = vrot.lane.b32.xlu0 %v1629_v57, %s1753_s11  ;;  %v2069_v57 = vld [vmem:[%s2144_s4] ss:$0 sm:$0xff]  ;;  %s1765_s4 = smov 12  }
0x11b1   :  { %v1631_v59 = vpop.eup %1630 }
0x11b2   :  { %v815_v60 = vmul.f32 0.5, %v1631_v59 }
0x11b4   :  { %v816_v61 = vadd.f32 0.5, %v815_v60 }
0x11b6   :  { %v818_v1 = vmul.f32 %v816_v61, %v726_v22  ;;  %v858_v22 = vsel %vm112_vm6, %v857_v19, %v856_v20 }
0x11b7   :  { %v860_v25 = vsel %vm115_vm7, %v859_v21, %v858_v22 }
0x11b8   :  { %v862_v27 = vsel %vm118_vm8, %v861_v24, %v860_v25 }
0x11b9   :  { %v864_v28 = vsel %vm121_vm9, %v863_v26, %v862_v27 }
0x1222   :  { %v821_v62 = vpop.permute.xlu0 %820 }
0x1223   :  { %v823_v63 = vmul.f32 %v821_v62, %v816_v61 }
0x1225   :  { %825 = vrot.lane.b32.xlu1 %v823_v63, %s1762_s18 }
0x1297   :  { %v826_v2 = vpop.permute.xlu1 %825 }
0x1298   :  { %v828_v3 = vadd.f32 %v826_v2, %v818_v1 }
0x129a   :  { %1632 = vtanh.f32 %v828_v3 }
0x12a4   :  { %v1633_v6 = vpop.eup %1632 }
0x12a5   :  { %831 = vrot.lane.b32.xlu0 %v1633_v6, %s1753_s11 }
0x1317   :  { %v832_v7 = vpop.permute.xlu0 %831 }
0x1318   :  { %v834_v8 = vmul.f32 %v832_v7, %v816_v61 }
0x131a   :  { %867 = vrot.lane.b32.xlu1 %v834_v8, %s1763_s2 }
0x138c   :  { %v868_v29 = vpop.permute.xlu1 %867 }
0x138d   :  { %v870_v30 = vsel %vm124_vm10, %v864_v28, %v868_v29 }
0x138e   :  { %v871_v31 = vpack.c.bf16 %v870_v30, %v870_v30 }
0x1390   :  { %1515 = vmatmul.mubr.msk.bf16.vlgmr.msra.gmra.mrb[12].mxu1 %vm150_vm11, %v871_v31 }
0x1391   :  { %1530 = vmatprep.mubr.msk.bf16.mxu1 %vm1760_vm1, %v1759_v0  ;;  %1529 = vmatpush3.bf16.msra.mxu1 %v1057_v13 }
0x1392   :  { %1534 = vmatprep.subr.bf16.mxu1 %v1759_v0 }
0x1463   :  { %v909_v33 = vpop.f32.mrb[12].mxu1 }
0x1464   :  { %v910_v34 = vadd.f32 %v1897_v32, %v909_v33  ;;  %v1516_v35 = vpop.f32.mrb[13].mxu1  ;;  %v2044_v32 = vld [vmem:[#allocation7] sm:$0xff]  }
0x1465   :  { %v912_v36 = vpop.f32.mrb[14].mxu1  ;;  %1519 = vmatpush3.bf16.msra.mxu0 %v2044_v32 }
0x1466   :  { %1634 = vtanh.f32 %v910_v34  ;;  %v1517_v37 = vpop.f32.mrb[15].mxu1  ;;  %v915_v39 = vmul.f32 0.5, %v910_v34  ;;  %1520 = vmatprep.subr.bf16.mxu0 %v1759_v0 }
0x1468   :  { %1636 = vtanh.f32 %v915_v39 }
0x1469   :  { %1521 = vmatpush3.bf16.msra.mxu0 %v2047_v48 }
0x146a   :  { %1522 = vmatprep.subr.bf16.mxu0 %v1759_v0 }
0x146d   :  { %1523 = vmatpush3.bf16.msra.mxu0 %v2054_v51 }
0x146e   :  { %1544 = vmatprep.subr.bf16.mxu0 %v1759_v0 }
0x1470   :  { %v1635_v38 = vpop.eup %1634 }
0x1471   :  { %922 = vrot.lane.b32.xlu0 %v1635_v38, %s1753_s11 }
0x1472   :  { %v1637_v40 = vpop.eup %1636 }
0x1473   :  { %v917_v41 = vmul.f32 0.5, %v1637_v40 }
0x1475   :  { %v918_v42 = vadd.f32 0.5, %v917_v41 }
0x1477   :  { %v920_v45 = vmul.f32 %v918_v42, %v828_v3 }
0x14e3   :  { %v923_v43 = vpop.permute.xlu0 %922 }
0x14e4   :  { %v925_v44 = vmul.f32 %v923_v43, %v918_v42 }
0x14e6   :  { %927 = vrot.lane.b32.xlu1 %v925_v44, %s1762_s18 }
0x1558   :  { %v928_v46 = vpop.permute.xlu1 %927 }
0x1559   :  { %v930_v47 = vadd.f32 %v928_v46, %v920_v45 }
0x155b   :  { %1638 = vtanh.f32 %v930_v47 }
0x1565   :  { %v1639_v49 = vpop.eup %1638 }
0x1566   :  { %933 = vrot.lane.b32.xlu0 %v1639_v49, %s1753_s11 }
0x15d8   :  { %v934_v52 = vpop.permute.xlu0 %933 }
0x15d9   :  { %v936_v53 = vmul.f32 %v934_v52, %v918_v42 }
0x15db   :  { %938 = vrot.lane.b32.xlu1 %v936_v53, %s1762_s18 }
0x164d   :  { %v2059_v54 = vpop.permute.xlu1 %938 }
0x164e   :  { %v942_v55 = vsel %vm941_vm13, %v2059_v54, 0.0 }
0x164f   :  { %v943_v56 = vpack.c.bf16 %v942_v55, %v942_v55 }
0x1651   :  { %1525 = vmatmul.mubr.msk.bf16.vlgmr.msra.gmra.mrb[16].mxu0 %vm967_vm14, %v943_v56 }
0x1652   :  { %1546 = vmatprep.mubr.msk.bf16.mxu0 %vm1760_vm1, %v1759_v0  ;;  %1545 = vmatpush3.bf16.msra.mxu0 %v1057_v13 }
0x1653   :  { %1550 = vmatprep.subr.bf16.mxu0 %v1759_v0 }
0x1724   :  { %v1009_v58 = vpop.f32.mrb[16].mxu0 }
0x1725   :  { %v1010_v59 = vadd.f32 %v2069_v57, %v1009_v58  ;;  %v1526_v60 = vpop.f32.mrb[17].mxu0 }
0x1726   :  { %v1012_v61 = vpop.f32.mrb[18].mxu0 }
0x1727   :  { %1640 = vtanh.f32 %v1010_v59  ;;  %v1527_v62 = vpop.f32.mrb[19].mxu0  ;;  %v1015_v1 = vmul.f32 0.5, %v1010_v59 }
0x1729   :  { %1642 = vtanh.f32 %v1015_v1 }
0x1731   :  { %v1641_v63 = vpop.eup %1640 }
0x1732   :  { %1022 = vrot.lane.b32.xlu0 %v1641_v63, %s1764_s20 }
0x1733   :  { %v1643_v2 = vpop.eup %1642 }
0x1734   :  { %v1017_v3 = vmul.f32 0.5, %v1643_v2 }
0x1736   :  { %v1018_v6 = vadd.f32 0.5, %v1017_v3  ;;  %v1381_v3 = vld [vmem:[%s2146_s6] ss:$0 sm:$0xff]  ;;  %s1770_s6 = smov [#allocation8]  }
0x1737   :  { %s1354_s27 = sshll.u32 %s1770_s6, 4  ;;  %s1355_s27 = int_to_ptr.vmem [resolvable:$true] %s1354_s27 }
0x1738   :  { %v1020_v9 = vmul.f32 0.0, %v1018_v6  ;;  %s1724_s28 = scalar_lea.vmem %s1355_s27, 128  ;;  %p1729_p11 = scmp.lt.s32.totalorder %s1355_s27, %s1355_s27 }
0x1739   :  { %p1725_p10 = scmp.ne.s32.totalorder %s1355_s27, %s1724_s28  ;;  %p1730_p12 = scmp.lt.s32.totalorder %s1724_s28, %s1724_s28 }
0x173b   :  { %p1731_p13 = por %p1730_p12, %p1729_p11 }
0x173d   :  { %p1732_p0 = pnand %p1731_p13, %p1725_p10 }
0x17a4   :  { %v1023_v7 = vpop.permute.xlu0 %1022 }
0x17a5   :  { %v1025_v8 = vmul.f32 %v1023_v7, %v1018_v6 }
0x17a7   :  { %1027 = vrot.lane.b32.xlu1 %v1025_v8, %s1765_s4 }
0x1819   :  { %v1028_v10 = vpop.permute.xlu1 %1027 }
0x181a   :  { %v1030_v11 = vadd.f32 %v1028_v10, %v1020_v9 }
0x181c   :  { %1644 = vtanh.f32 %v1030_v11 }
0x1826   :  { %v1645_v4 = vpop.eup %1644 }
0x1827   :  { %1033 = vrot.lane.b32.xlu0 %v1645_v4, %s1766_s23 }
0x1899   :  { %v1034_v14 = vpop.permute.xlu0 %1033 }
0x189a   :  { %v1036_v15 = vmul.f32 %v1034_v14, %v1018_v6 }
0x189c   :  { %v1037_v16 = vpack.c.bf16 %v1036_v15, %v1036_v15  ;;  %1100 = vrot.lane.b32.xlu0 %v1036_v15, %s1767_s24 }
0x189e   :  { %1045 = vrot.lane.b32.xlu1 %v1037_v16, %s1768_s1 }
0x190e   :  { %v1101_v18 = vpop.permute.xlu0 %1100 }
0x190f   :  { %v1103_v19 = vsel %vm941_vm13, %v2059_v54, %v1101_v18 }
0x1910   :  { %v1046_v5 = vpop.permute.xlu1 %1045  ;;  %v1104_v20 = vpack.c.bf16 %v1103_v19, %v1103_v19 }
0x1911   :  { %1531 = vmatmul.mubr.msk.bf16.vlgmr.msra.gmra.mrb[16].mxu1 %vm1052_vm15, %v1046_v5 }
0x1912   :  { %1535 = vmatpush3.bf16.msra.mxu1 %v2044_v32  ;;  %1540 = vmatprep.mubr.msk.bf16.mxu1 %vm1760_vm1, %v1759_v0 }
0x1913   :  { %1536 = vmatprep.subr.bf16.mxu1 %v1759_v0 }
0x1916   :  { %1537 = vmatpush3.bf16.msra.mxu1 %v2047_v48 }
0x1917   :  { %1538 = vmatprep.subr.bf16.mxu1 %v1759_v0 }
0x191a   :  { %1539 = vmatpush3.bf16.msra.mxu1 %v2054_v51 }
0x191b   :  { %1560 = vmatprep.subr.bf16.mxu1 %v1759_v0 }
0x191d   :  { %1541 = vmatmul.mubr.msk.bf16.vlgmr.msra.gmra.mrb[20].mxu1 %vm967_vm14, %v1104_v20 }
0x191e   :  { %1561 = vmatpush3.bf16.msra.mxu1 %v1057_v13  ;;  %1562 = vmatprep.mubr.msk.bf16.mxu1 %vm1760_vm1, %v1759_v0 }
0x19e4   :  { %v2097_v17 = vpop.f32.mrb[16].mxu1 }
0x19e5   :  { %v1532_v21 = vpop.f32.mrb[17].mxu1  ;;  %v1094_v16 = vadd.f32 %v1381_v3, %v2097_v17 }
0x19e6   :  { %v1096_v22 = vpop.f32.mrb[18].mxu1 }
0x19e7   :  { %v1533_v23 = vpop.f32.mrb[19].mxu1 }
0x19f0   :  { %v1142_v24 = vpop.f32.mrb[20].mxu1 }
0x19f1   :  { %v1143_v25 = vadd.f32 %v2069_v57, %v1142_v24  ;;  %v1542_v26 = vpop.f32.mrb[21].mxu1 }
0x19f2   :  { %v1145_v27 = vpop.f32.mrb[22].mxu1 }
0x19f3   :  { %1646 = vtanh.f32 %v1143_v25  ;;  %v1543_v28 = vpop.f32.mrb[23].mxu1  ;;  %v1148_v30 = vmul.f32 0.5, %v1143_v25 }
0x19f5   :  { %1648 = vtanh.f32 %v1148_v30 }
0x19fd   :  { %v1647_v29 = vpop.eup %1646 }
0x19fe   :  { %1155 = vrot.lane.b32.xlu1 %v1647_v29, %s1764_s20 }
0x19ff   :  { %v1649_v31 = vpop.eup %1648 }
0x1a00   :  { %v1150_v33 = vmul.f32 0.5, %v1649_v31 }
0x1a02   :  { %v1151_v34 = vadd.f32 0.5, %v1150_v33 }
0x1a04   :  { %v1153_v37 = vmul.f32 %v1151_v34, %v1030_v11 }
0x1a70   :  { %v1156_v35 = vpop.permute.xlu1 %1155 }
0x1a71   :  { %v1158_v36 = vmul.f32 %v1156_v35, %v1151_v34 }
0x1a73   :  { %1160 = vrot.lane.b32.xlu0 %v1158_v36, %s1765_s4 }
0x1ae5   :  { %v1161_v38 = vpop.permute.xlu0 %1160 }
0x1ae6   :  { %v1163_v39 = vadd.f32 %v1161_v38, %v1153_v37 }
0x1ae8   :  { %1650 = vtanh.f32 %v1163_v39 }
0x1af2   :  { %v1651_v40 = vpop.eup %1650 }
0x1af3   :  { %1166 = vrot.lane.b32.xlu1 %v1651_v40, %s1766_s23 }
0x1b65   :  { %v1167_v41 = vpop.permute.xlu1 %1166 }
0x1b66   :  { %v1169_v42 = vmul.f32 %v1167_v41, %v1151_v34 }
0x1b68   :  { %v1170_v43 = vpack.c.bf16 %v1169_v42, %v1169_v42  ;;  %1218 = vrot.lane.b32.xlu1 %v1169_v42, %s1767_s24 }
0x1b6a   :  { %1172 = vrot.lane.b32.xlu0 %v1170_v43, %s1768_s1 }
0x1bda   :  { %v1219_v45 = vpop.permute.xlu1 %1218 }
0x1bdb   :  { %v1221_v46 = vsel %vm941_vm13, %v2059_v54, %v1219_v45 }
0x1bdc   :  { %v1173_v44 = vpop.permute.xlu0 %1172  ;;  %v1222_v47 = vpack.c.bf16 %v1221_v46, %v1221_v46 }
0x1bdd   :  { %1547 = vmatmul.mubr.msk.bf16.vlgmr.msra.gmra.mrb[20].mxu0 %vm1052_vm15, %v1173_v44 }
0x1bde   :  { %1551 = vmatpush3.bf16.msra.mxu0 %v2044_v32  ;;  %1556 = vmatprep.mubr.msk.bf16.mxu0 %vm1760_vm1, %v1759_v0  ;;  %vm1346_vm1 = vcmask 146432  }
0x1bdf   :  { %1552 = vmatprep.subr.bf16.mxu0 %v1759_v0 }
0x1be2   :  { %1553 = vmatpush3.bf16.msra.mxu0 %v2047_v48 }
0x1be3   :  { %1554 = vmatprep.subr.bf16.mxu0 %v1759_v0 }
0x1be6   :  { %1555 = vmatpush3.bf16.msra.mxu0 %v2054_v51 }
0x1be9   :  { %1557 = vmatmul.mubr.msk.bf16.vlgmr.msra.gmra.mrb[24].mxu0 %vm967_vm14, %v1222_v47 }
0x1cb0   :  { %v1211_v49 = vpop.f32.mrb[20].mxu0 }
0x1cb1   :  { %v1548_v32 = vpop.f32.mrb[21].mxu0  ;;  %v1212_v6 = vadd.f32 %v1381_v3, %v1211_v49 }
0x1cb2   :  { %v1214_v50 = vpop.f32.mrb[22].mxu0 }
0x1cb3   :  { %v1549_v52 = vpop.f32.mrb[23].mxu0 }
0x1cbc   :  { %v1260_v53 = vpop.f32.mrb[24].mxu0 }
0x1cbd   :  { %v1261_v55 = vadd.f32 %v2069_v57, %v1260_v53  ;;  %v1558_v56 = vpop.f32.mrb[25].mxu0 }
0x1cbe   :  { %v1263_v58 = vpop.f32.mrb[26].mxu0 }
0x1cbf   :  { %1652 = vtanh.f32 %v1261_v55  ;;  %v1559_v48 = vpop.f32.mrb[27].mxu0  ;;  %v1266_v54 = vmul.f32 0.5, %v1261_v55 }
0x1cc1   :  { %1654 = vtanh.f32 %v1266_v54 }
0x1cc9   :  { %v1653_v0 = vpop.eup %1652 }
0x1cca   :  { %1273 = vrot.lane.b32.xlu0 %v1653_v0, %s1764_s20 }
0x1ccb   :  { %v1655_v51 = vpop.eup %1654 }
0x1ccc   :  { %v1268_v59 = vmul.f32 0.5, %v1655_v51 }
0x1cce   :  { %v1269_v60 = vadd.f32 0.5, %v1268_v59 }
0x1cd0   :  { %v1271_v63 = vmul.f32 %v1269_v60, %v1163_v39 }
0x1d3c   :  { %v1274_v61 = vpop.permute.xlu0 %1273 }
0x1d3d   :  { %v1276_v62 = vmul.f32 %v1274_v61, %v1269_v60 }
0x1d3f   :  { %1278 = vrot.lane.b32.xlu1 %v1276_v62, %s1765_s4 }
0x1db1   :  { %v1279_v1 = vpop.permute.xlu1 %1278 }
0x1db2   :  { %v1281_v2 = vadd.f32 %v1279_v1, %v1271_v63 }
0x1db4   :  { %1656 = vtanh.f32 %v1281_v2 }
0x1dbe   :  { %v1657_v57 = vpop.eup %1656 }
0x1dbf   :  { %1284 = vrot.lane.b32.xlu0 %v1657_v57, %s1766_s23 }
0x1dc3   :  { %1336 = vrot.lane.b32.xlu0 %v1212_v6, %s1769_s26 }
0x1e31   :  { %v1285_v7 = vpop.permute.xlu0 %1284 }
0x1e32   :  { %v1287_v8 = vmul.f32 %v1285_v7, %v1269_v60 }
0x1e34   :  { %v1288_v9 = vpack.c.bf16 %v1287_v8, %v1287_v8 }
0x1e35   :  { %v1337_v15 = vpop.permute.xlu0 %1336 }
0x1e36   :  { %1290 = vrot.lane.b32.xlu1 %v1288_v9, %s1768_s1  ;;  %v1344_v5 = vsel %vm1343_vm0, %v1094_v16, %v1337_v15 }
0x1ea8   :  { %v1291_v10 = vpop.permute.xlu1 %1290 }
0x1ea9   :  { %1563 = vmatmul.mubr.msk.bf16.vlgmr.msra.gmra.mrb[24].mxu1 %vm1052_vm15, %v1291_v10 }
0x1f7c   :  { %v1329_v11 = vpop.f32.mrb[24].mxu1 }
0x1f7d   :  { %v1330_v12 = vadd.f32 %v1381_v3, %v1329_v11  ;;  %v1564_v13 = vpop.f32.mrb[25].mxu1 }
0x1f7e   :  { %v1332_v4 = vpop.f32.mrb[26].mxu1 }
0x1f7f   :  { %1340 = vrot.lane.b32.xlu1 %v1330_v12, %s1765_s4  ;;  %v1565_v14 = vpop.f32.mrb[27].mxu1 }
0x1ff1   :  { %v1341_v18 = vpop.permute.xlu1 %1340 }
0x1ff2   :  { %v1345_v19 = vsel %vm1052_vm15, %v1344_v5, %v1341_v18 }
0x1ff3   :  { %1347 = vst.msk [vmem:[#allocation8] sm:$0xff] %vm1346_vm1, %v1345_v19 }
0x1ff4   :  { %1735 = shalt.err (!%p1732_p0)
}
0x1ff5   :  { %s1736_s8 = scalar_lea.hbm %s2147_s7, 128 }
0x1ff6   :  { %p1737_p1 = scmp.ne.s32.totalorder %s2147_s7, %s1736_s8  ;;  %p1740_p2 = scmp.lt.u32.totalorder %s1736_s8, %s2147_s7 }
0x1ff8   :  { %p1742_p3 = pnand %p1740_p2, %p1737_p1 }
0x1ffa   :  { %1745 = shalt.err (!%p1742_p3)
}
0x1ffb   :  { %1357 = dma.vmem_to_hbm [thread:$0]  %s1355_s27, 128, %s2147_s7, [#allocation4]  }
0x1ffc   :  { %1750 = dma.done.wait [#allocation4], 128  }
0x1ffd   :  { %1751 = vsyncadd [#allocation4], 4294967168 }
0x1ffe   :  { %1361 = vsyncpa [#allocation3], 1 }
0x1fff   :  { %1362 = vsyncpa [#allocation6], 1 }
0x2000   :  { %1363 = vsyncpa [#allocation4], 1 }

</bundles_post_ra>
